<compile_context>
chip_gen: v7x
topology: tpu7x:2x2x1
jax: 0.10.0
libtpu: 0.0.40
codegen_flags: <defaults>
</compile_context>

<pallas_src>
import functools

import jax
import jax.numpy as jnp
from jax import lax
from jax.experimental import pallas as pl
from jax.experimental.pallas import tpu as pltpu

BN_EPS = 1e-5
EXPANSION = 4          # ResNetConfig.BOTTLENECK_EXPANSION
BASE_WIDTH = 64        # ResNetConfig.CHANNELS_ORDERING[0]
LANES = 128


def _round_up(x, m):
    return (x + m - 1) // m * m


def _pick_batch_tile(n):
    """Largest divisor of n (capped at 8) that still leaves >= 2 grid steps."""
    best = 1
    for bt in range(1, min(n, 8) + 1):
        if n % bt == 0 and n // bt >= 2:
            best = bt
    return best


# ---------------------------------------------------------------------------
# Fused bottleneck kernel: one grid step == `bt` images.
#
# Layout: each image is spatially pre-padded by d, its row width padded to
# wp_pad = round_up(w+2d, 8), flattened to rows_in rows with channels lane-dense
# on the 128-lane axis.  Every conv is a 2-D MXU matmul; the 3x3 becomes one
# deep-K matmul over the concatenated 9 row-shifted windows of the conv1 output.
# Columns j in [w, wp_pad) of each extended output row are junk and are sliced
# away by the wrapper.
# ---------------------------------------------------------------------------
def _bottleneck_kernel(x_ref, r_ref, m_ref,
                       w1_ref, s1_ref, b1_ref,
                       w2_ref, s2_ref, b2_ref,
                       w3_ref, s3_ref, b3_ref,
                       o_ref, *, bt, rows_in, wp_pad, d, n_ext, wdp):
    cp = x_ref.shape[-1]

    # conv1 (1x1) + bn1 + relu: one lane-dense MXU matmul over all bt*rows_in rows.
    x2d = x_ref[...].reshape(bt * rows_in, cp)                 # bf16
    h1 = jnp.dot(x2d, w1_ref[...], preferred_element_type=jnp.float32)
    h1 = jnp.maximum(h1 * s1_ref[...] + b1_ref[...], 0.0)
    # Zero the spatial-pad border / tail rows so the 3x3 conv sees true zero padding;
    # cast to bf16 for the MXU taps.
    h1 = (h1.reshape(bt, rows_in, wdp) * m_ref[...]).astype(jnp.bfloat16)

    # conv2: 3x3, stride 1, dilation d.  Hoist the 3 kx shifts (at most 2 misaligned
    # sublane copies), take 8-aligned ky slices, concatenate along K and do ONE
    # K = 9*wdp MXU matmul with internal accumulation.
    span = n_ext + 2 * wp_pad * d
    shifted = [h1[:, kx * d:kx * d + span, :] for kx in range(3)]
    taps = [shifted[kx][:, ky * wp_pad * d:ky * wp_pad * d + n_ext, :]
            for ky in range(3) for kx in range(3)]
    tapk = jnp.concatenate(taps, axis=-1).reshape(bt * n_ext, 9 * wdp)
    h2 = jnp.dot(tapk, w2_ref[...], preferred_element_type=jnp.float32)
    h2 = jnp.maximum(h2 * s2_ref[...] + b2_ref[...], 0.0).astype(jnp.bfloat16)

    # conv3 (1x1) + bn3 + identity residual (pre-sliced, lane-dense) + relu.
    h3 = jnp.dot(h2, w3_ref[...], preferred_element_type=jnp.float32)
    res = r_ref[...].reshape(bt * n_ext, cp).astype(jnp.float32)
    h3 = jnp.maximum(h3 * s3_ref[...] + b3_ref[...] + res, 0.0)
    o_ref[...] = h3.reshape(bt, n_ext, cp).astype(o_ref.dtype)


# ---------------------------------------------------------------------------
# BN folding / parameter init
# ---------------------------------------------------------------------------
def _fold_bn(gamma, beta, mean, var):
    scale = gamma / jnp.sqrt(var + BN_EPS)
    return scale, beta - mean * scale


def init_bottleneck_params(key, inplanes, planes, base_width=BASE_WIDTH):
    width = int(planes * (base_width / BASE_WIDTH))
    cout = planes * EXPANSION
    keys = jax.random.split(key, 6)

    def conv_w(k, co, ci, kh, kw):
        fan_in = ci * kh * kw
        return jax.random.normal(k, (co, ci, kh, kw), jnp.float32) / jnp.sqrt(fan_in)

    def bn_p(k, c):
        k1, k2, k3, k4 = jax.random.split(k, 4)
        gamma = 1.0 + 0.1 * jax.random.normal(k1, (c,), jnp.float32)
        beta = 0.1 * jax.random.normal(k2, (c,), jnp.float32)
        mean = 0.1 * jax.random.normal(k3, (c,), jnp.float32)
        var = jax.random.uniform(k4, (c,), jnp.float32, 0.5, 1.5)
        return gamma, beta, mean, var

    return dict(
        w1=conv_w(keys[0], width, inplanes, 1, 1),   # PyTorch OIHW
        w2=conv_w(keys[1], width, width, 3, 3),
        w3=conv_w(keys[2], cout, width, 1, 1),
        bn1=bn_p(keys[3], width),
        bn2=bn_p(keys[4], width),
        bn3=bn_p(keys[5], cout),
    )


# ---------------------------------------------------------------------------
# BottleneckBlock forward (downsample=None path: stride=1, cout == cin)
# ---------------------------------------------------------------------------
def bottleneck_forward(x_nchw, params, *, dilation=1, batch_tile=None):
    n, cin, h, w = x_nchw.shape
    width = params["w1"].shape[0]
    cout = params["w3"].shape[0]
    assert cout == cin, "identity path (downsample=None) requires cout == cin"
    d = int(dilation)
    hp, wp = h + 2 * d, w + 2 * d
    wp_pad = _round_up(wp, 8)            # sublane-aligned extended row width
    cp = _round_up(cin, LANES)           # lane-dense channels: x / residual / output
    wdp = _round_up(width, LANES)        # lane-dense bottleneck width
    n_ext = h * wp_pad                   # extended output rows (cols >= w are junk)
    rows_real = hp * wp_pad + 2 * d      # + tail so every tap slice stays in bounds
    rows_in = _round_up(rows_real, 8)

    bt = batch_tile or _pick_batch_tile(n)
    assert n % bt == 0

    # Activations: NHWC bf16, zero spatial pad (left d, right wp_pad-w-d), zero
    # channel pad to cp, flatten rows, zero-pad to rows_in.
    # TODO(synk): boundary NCHW<->NHWC transpose is required by the PyTorch layout.
    x_nhwc = jnp.transpose(x_nchw, (0, 2, 3, 1)).astype(jnp.bfloat16)
    x_pad = jnp.pad(x_nhwc, ((0, 0), (d, d), (d, wp_pad - w - d), (0, cp - cin)))
    x_flat = x_pad.reshape(n, hp * wp_pad, cp)
    x_flat = jnp.pad(x_flat, ((0, 0), (0, rows_in - hp * wp_pad), (0, 0)))

    # Residual pre-sliced wrapper-side (avoids a sublane-misaligned in-kernel slice).
    res_off = d * wp_pad + d
    residual = x_flat[:, res_off:res_off + n_ext, :]

    # Validity mask: 1.0 on real pixels, 0.0 on spatial-pad border / tail rows.
    mask = jnp.pad(jnp.ones((h, w), jnp.float32), ((d, d), (d, wp_pad - w - d)))
    mask = mask.reshape(hp * wp_pad, 1)
    mask = jnp.pad(mask, ((0, rows_in - hp * wp_pad), (0, 0)))

    # Weights (bf16, lane-dense) and folded BN scale/bias (f32 epilogue).
    w1 = params["w1"].reshape(width, cin).T                              # (cin, width)
    w1 = jnp.pad(w1, ((0, cp - cin), (0, wdp - width))).astype(jnp.bfloat16)
    w2 = jnp.transpose(params["w2"], (2, 3, 1, 0))                       # (ky,kx,in,out)
    w2 = jnp.pad(w2, ((0, 0), (0, 0), (0, wdp - width), (0, wdp - width)))
    w2 = w2.reshape(9 * wdp, wdp).astype(jnp.bfloat16)                   # deep-K RHS
    w3 = params["w3"].reshape(cout, width).T                             # (width, cout)
    w3 = jnp.pad(w3, ((0, wdp - width), (0, cp - cout))).astype(jnp.bfloat16)

    s1, b1 = _fold_bn(*params["bn1"])
    s2, b2 = _fold_bn(*params["bn2"])
    s3, b3 = _fold_bn(*params["bn3"])
    s1, b1, s2, b2 = [jnp.pad(v, (0, wdp - width)).reshape(1, wdp).astype(jnp.float32)
                      for v in (s1, b1, s2, b2)]
    s3, b3 = [jnp.pad(v, (0, cp - cout)).reshape(1, cp).astype(jnp.float32)
              for v in (s3, b3)]

    kernel = functools.partial(_bottleneck_kernel, bt=bt, rows_in=rows_in,
                               wp_pad=wp_pad, d=d, n_ext=n_ext, wdp=wdp)
    rep = lambda i: (0, 0)

    # Rough VMEM working-set estimate; raise the scoped limit only when the default
    # would be tight (never triggers at the small test shapes, so safe on v7x too).
    est = (2 * bt * (rows_in + 2 * n_ext) * cp * 2          # x/res/out double buffers
           + (cp * wdp + 9 * wdp * wdp + wdp * cp) * 2      # resident weights
           + bt * n_ext * 9 * wdp * 2                       # tap matrix
           + bt * rows_in * wdp * 4)                        # h1 (f32 worst case)
    cp_kwargs = dict(dimension_semantics=("parallel",))
    if est > 12 * 1024 * 1024:
        cp_kwargs["vmem_limit_bytes"] = min(int(2 * est), 48 * 1024 * 1024)

    out_ext = pl.pallas_call(
        kernel,
        out_shape=jax.ShapeDtypeStruct((n, n_ext, cp), jnp.bfloat16),
        grid_spec=pltpu.PrefetchScalarGridSpec(
            num_scalar_prefetch=0,
            grid=(n // bt,),
            in_specs=[
                pl.BlockSpec((bt, rows_in, cp), lambda i: (i, 0, 0)),   # x (padded)
                pl.BlockSpec((bt, n_ext, cp), lambda i: (i, 0, 0)),     # residual
                pl.BlockSpec((rows_in, 1), rep),                        # mask
                pl.BlockSpec((cp, wdp), rep),                           # w1
                pl.BlockSpec((1, wdp), rep),                            # s1
                pl.BlockSpec((1, wdp), rep),                            # b1
                pl.BlockSpec((9 * wdp, wdp), rep),                      # w2 (deep-K)
                pl.BlockSpec((1, wdp), rep),                            # s2
                pl.BlockSpec((1, wdp), rep),                            # b2
                pl.BlockSpec((wdp, cp), rep),                           # w3
                pl.BlockSpec((1, cp), rep),                             # s3
                pl.BlockSpec((1, cp), rep),                             # b3
            ],
            out_specs=pl.BlockSpec((bt, n_ext, cp), lambda i: (i, 0, 0)),
        ),
        compiler_params=pltpu.CompilerParams(**cp_kwargs),
    )(x_flat, residual, mask, w1, s1, b1, w2, s2, b2, w3, s3, b3)

    # Drop the junk columns / padded channels, back to NCHW f32 (one fused XLA pass).
    out = out_ext.reshape(n, h, wp_pad, cp)[:, :, :w, :cout]
    return jnp.transpose(out, (0, 3, 1, 2)).astype(jnp.float32)


# ---------------------------------------------------------------------------
# Pure-JAX reference (same math, via lax.conv) for the correctness check
# ---------------------------------------------------------------------------
def bottleneck_reference(x_nchw, params, *, dilation=1):
    x = jnp.transpose(x_nchw, (0, 2, 3, 1)).astype(jnp.float32)

    def conv(inp, w_oihw, dil, padding):
        wgt = jnp.transpose(w_oihw, (2, 3, 1, 0))
        return lax.conv_general_dilated(
            inp, wgt, (1, 1), ((padding, padding), (padding, padding)),
            rhs_dilation=(dil, dil),
            dimension_numbers=("NHWC", "HWIO", "NHWC"),
            precision=lax.Precision.HIGHEST)

    def bn(inp, p):
        g, b, m, v = p
        return (inp - m) * (g / jnp.sqrt(v + BN_EPS)) + b

    out = jax.nn.relu(bn(conv(x, params["w1"], 1, 0), params["bn1"]))
    out = jax.nn.relu(bn(conv(out, params["w2"], dilation, dilation), params["bn2"]))
    out = bn(conv(out, params["w3"], 1, 0), params["bn3"])
    out = jax.nn.relu(out + x)
    return jnp.transpose(out, (0, 3, 1, 2))


if __name__ == "__main__":
    key = jax.random.PRNGKey(0)
    k_x, k_p = jax.random.split(key)

    # Small shapes: batch=2, inplanes=64 (= planes*expansion), planes=16 -> width=16,
    # out channels=64, spatial 8x8, stride=1, downsample=None.
    N, INPLANES, H, W = 2, 64, 8, 8
    PLANES = 16

    x = jax.random.normal(k_x, (N, INPLANES, H, W), jnp.float32)   # PyTorch NCHW input
    params = init_bottleneck_params(k_p, INPLANES, PLANES)

    y = jax.block_until_ready(bottleneck_forward(x, params, dilation=1))
    assert y.shape == (N, PLANES * EXPANSION, H, W)

    # Reference fed with the same bf16-quantized inputs/weights (accumulation stays
    # f32 in the kernel, so only intermediate bf16 rounding differs — intentional).
    xq = x.astype(jnp.bfloat16).astype(jnp.float32)
    paramsq = dict(params)
    for name in ("w1", "w2", "w3"):
        paramsq[name] = params[name].astype(jnp.bfloat16).astype(jnp.float32)

    y_ref = jax.block_until_ready(bottleneck_reference(xq, paramsq, dilation=1))
    err = float(jnp.max(jnp.abs(y - y_ref)))
    assert jnp.allclose(y, y_ref, rtol=5e-2, atol=5e-2), err

    # Dilated variant (dilation=2, padding=2) through the same fused kernel.
    y2 = jax.block_until_ready(bottleneck_forward(x, params, dilation=2))
    y2_ref = jax.block_until_ready(bottleneck_reference(xq, paramsq, dilation=2))
    err2 = float(jnp.max(jnp.abs(y2 - y2_ref)))
    assert jnp.allclose(y2, y2_ref, rtol=5e-2, atol=5e-2), err2

    print("KERNEL_OK")
</pallas_src>

<mosaic_0001>
module attributes {stable_mosaic.version = 11 : i64} {
  func.func @_bottleneck_kernel(%arg0: i32, %arg1: memref<1x168x128xbf16, #tpu.memory_space<vmem>>, %arg2: memref<1x128x128xbf16, #tpu.memory_space<vmem>>, %arg3: memref<168x1xf32, #tpu.memory_space<vmem>>, %arg4: memref<128x128xbf16, #tpu.memory_space<vmem>>, %arg5: memref<1x128xf32, #tpu.memory_space<vmem>>, %arg6: memref<1x128xf32, #tpu.memory_space<vmem>>, %arg7: memref<1152x128xbf16, #tpu.memory_space<vmem>>, %arg8: memref<1x128xf32, #tpu.memory_space<vmem>>, %arg9: memref<1x128xf32, #tpu.memory_space<vmem>>, %arg10: memref<128x128xbf16, #tpu.memory_space<vmem>>, %arg11: memref<1x128xf32, #tpu.memory_space<vmem>>, %arg12: memref<1x128xf32, #tpu.memory_space<vmem>>, %arg13: memref<1x128x128xbf16, #tpu.memory_space<vmem>>) attributes {dimension_semantics = [#tpu.dimension_semantics<parallel>], iteration_bounds = array<i64: 2>, scalar_prefetch = 0 : i64, scratch_operands = 0 : i64, tpu.core_type = #tpu.core_type<tc>, window_params = [{transform_indices = @transform_0, window_bounds = array<i64: 1, 168, 128>}, {transform_indices = @transform_1, window_bounds = array<i64: 1, 128, 128>}, {pipeline_mode = #tpu.pipeline_mode<synchronous>, transform_indices = @transform_2, window_bounds = array<i64: 168, 1>}, {pipeline_mode = #tpu.pipeline_mode<synchronous>, transform_indices = @transform_3, window_bounds = array<i64: 128, 128>}, {pipeline_mode = #tpu.pipeline_mode<synchronous>, transform_indices = @transform_4, window_bounds = array<i64: 1, 128>}, {pipeline_mode = #tpu.pipeline_mode<synchronous>, transform_indices = @transform_5, window_bounds = array<i64: 1, 128>}, {pipeline_mode = #tpu.pipeline_mode<synchronous>, transform_indices = @transform_6, window_bounds = array<i64: 1152, 128>}, {pipeline_mode = #tpu.pipeline_mode<synchronous>, transform_indices = @transform_7, window_bounds = array<i64: 1, 128>}, {pipeline_mode = #tpu.pipeline_mode<synchronous>, transform_indices = @transform_8, window_bounds = array<i64: 1, 128>}, {pipeline_mode = #tpu.pipeline_mode<synchronous>, transform_indices = @transform_9, window_bounds = array<i64: 128, 128>}, {pipeline_mode = #tpu.pipeline_mode<synchronous>, transform_indices = @transform_10, window_bounds = array<i64: 1, 128>}, {pipeline_mode = #tpu.pipeline_mode<synchronous>, transform_indices = @transform_11, window_bounds = array<i64: 1, 128>}, {transform_indices = @transform_12, window_bounds = array<i64: 1, 128, 128>}]} {
    %c0 = arith.constant 0 : index
    %c0_0 = arith.constant 0 : index
    %c0_1 = arith.constant 0 : index
    %0 = vector.load %arg1[%c0, %c0_0, %c0_1] : memref<1x168x128xbf16, #tpu.memory_space<vmem>>, vector<1x168x128xbf16>
    %1 = vector.shape_cast %0 : vector<1x168x128xbf16> to vector<168x128xbf16>
    %c0_2 = arith.constant 0 : index
    %c0_3 = arith.constant 0 : index
    %2 = vector.load %arg4[%c0_2, %c0_3] : memref<128x128xbf16, #tpu.memory_space<vmem>>, vector<128x128xbf16>
    %cst = arith.constant dense<0.000000e+00> : vector<168x128xf32>
    %3 = tpu.matmul %1, %2, %cst {dimension_numbers = #tpu.dot_dimension_numbers<[1], [0], [0], [1], [0, 0, 1, 1], [], []>} : vector<168x128xbf16>, vector<128x128xbf16>, vector<168x128xf32> -> vector<168x128xf32>
    %c0_4 = arith.constant 0 : index
    %c0_5 = arith.constant 0 : index
    %4 = vector.load %arg5[%c0_4, %c0_5] : memref<1x128xf32, #tpu.memory_space<vmem>>, vector<1x128xf32>
    %5 = vector.broadcast %4 : vector<1x128xf32> to vector<168x128xf32>
    %6 = arith.mulf %3, %5 : vector<168x128xf32>
    %c0_6 = arith.constant 0 : index
    %c0_7 = arith.constant 0 : index
    %7 = vector.load %arg6[%c0_6, %c0_7] : memref<1x128xf32, #tpu.memory_space<vmem>>, vector<1x128xf32>
    %8 = vector.broadcast %7 : vector<1x128xf32> to vector<168x128xf32>
    %9 = arith.addf %6, %8 : vector<168x128xf32>
    %cst_8 = arith.constant 0.000000e+00 : f32
    %10 = vector.broadcast %cst_8 : f32 to vector<168x128xf32>
    %11 = arith.maximumf %9, %10 : vector<168x128xf32>
    %12 = vector.shape_cast %11 : vector<168x128xf32> to vector<1x168x128xf32>
    %c0_9 = arith.constant 0 : index
    %c0_10 = arith.constant 0 : index
    %13 = vector.load %arg3[%c0_9, %c0_10] : memref<168x1xf32, #tpu.memory_space<vmem>>, vector<168x1xf32>
    %14 = vector.shape_cast %13 : vector<168x1xf32> to vector<1x168x1xf32>
    %15 = vector.broadcast %14 : vector<1x168x1xf32> to vector<1x168x128xf32>
    %16 = arith.mulf %12, %15 : vector<1x168x128xf32>
    %17 = arith.truncf %16 : vector<1x168x128xf32> to vector<1x168x128xbf16>
    %18 = vector.extract_strided_slice %17 {offsets = [0, 0, 0], sizes = [1, 160, 128], strides = [1, 1, 1]} : vector<1x168x128xbf16> to vector<1x160x128xbf16>
    %19 = vector.extract_strided_slice %17 {offsets = [0, 1, 0], sizes = [1, 160, 128], strides = [1, 1, 1]} : vector<1x168x128xbf16> to vector<1x160x128xbf16>
    %20 = vector.extract_strided_slice %17 {offsets = [0, 2, 0], sizes = [1, 160, 128], strides = [1, 1, 1]} : vector<1x168x128xbf16> to vector<1x160x128xbf16>
    %21 = vector.extract_strided_slice %18 {offsets = [0, 0, 0], sizes = [1, 128, 128], strides = [1, 1, 1]} : vector<1x160x128xbf16> to vector<1x128x128xbf16>
    %22 = vector.extract_strided_slice %19 {offsets = [0, 0, 0], sizes = [1, 128, 128], strides = [1, 1, 1]} : vector<1x160x128xbf16> to vector<1x128x128xbf16>
    %23 = vector.extract_strided_slice %20 {offsets = [0, 0, 0], sizes = [1, 128, 128], strides = [1, 1, 1]} : vector<1x160x128xbf16> to vector<1x128x128xbf16>
    %24 = vector.extract_strided_slice %18 {offsets = [0, 16, 0], sizes = [1, 128, 128], strides = [1, 1, 1]} : vector<1x160x128xbf16> to vector<1x128x128xbf16>
    %25 = vector.extract_strided_slice %19 {offsets = [0, 16, 0], sizes = [1, 128, 128], strides = [1, 1, 1]} : vector<1x160x128xbf16> to vector<1x128x128xbf16>
    %26 = vector.extract_strided_slice %20 {offsets = [0, 16, 0], sizes = [1, 128, 128], strides = [1, 1, 1]} : vector<1x160x128xbf16> to vector<1x128x128xbf16>
    %27 = vector.extract_strided_slice %18 {offsets = [0, 32, 0], sizes = [1, 128, 128], strides = [1, 1, 1]} : vector<1x160x128xbf16> to vector<1x128x128xbf16>
    %28 = vector.extract_strided_slice %19 {offsets = [0, 32, 0], sizes = [1, 128, 128], strides = [1, 1, 1]} : vector<1x160x128xbf16> to vector<1x128x128xbf16>
    %29 = vector.extract_strided_slice %20 {offsets = [0, 32, 0], sizes = [1, 128, 128], strides = [1, 1, 1]} : vector<1x160x128xbf16> to vector<1x128x128xbf16>
    %30 = tpu.concatenate %21, %22, %23, %24, %25, %26, %27, %28, %29 in 2 : vector<1x128x128xbf16>, vector<1x128x128xbf16>, vector<1x128x128xbf16>, vector<1x128x128xbf16>, vector<1x128x128xbf16>, vector<1x128x128xbf16>, vector<1x128x128xbf16>, vector<1x128x128xbf16>, vector<1x128x128xbf16> -> vector<1x128x1152xbf16>
    %31 = vector.shape_cast %30 : vector<1x128x1152xbf16> to vector<128x1152xbf16>
    %c0_11 = arith.constant 0 : index
    %c0_12 = arith.constant 0 : index
    %32 = vector.load %arg7[%c0_11, %c0_12] : memref<1152x128xbf16, #tpu.memory_space<vmem>>, vector<1152x128xbf16>
    %cst_13 = arith.constant dense<0.000000e+00> : vector<128x128xf32>
    %33 = tpu.matmul %31, %32, %cst_13 {dimension_numbers = #tpu.dot_dimension_numbers<[1], [0], [0], [1], [0, 0, 1, 1], [], []>} : vector<128x1152xbf16>, vector<1152x128xbf16>, vector<128x128xf32> -> vector<128x128xf32>
    %c0_14 = arith.constant 0 : index
    %c0_15 = arith.constant 0 : index
    %34 = vector.load %arg8[%c0_14, %c0_15] : memref<1x128xf32, #tpu.memory_space<vmem>>, vector<1x128xf32>
    %35 = vector.broadcast %34 : vector<1x128xf32> to vector<128x128xf32>
    %36 = arith.mulf %33, %35 : vector<128x128xf32>
    %c0_16 = arith.constant 0 : index
    %c0_17 = arith.constant 0 : index
    %37 = vector.load %arg9[%c0_16, %c0_17] : memref<1x128xf32, #tpu.memory_space<vmem>>, vector<1x128xf32>
    %38 = vector.broadcast %37 : vector<1x128xf32> to vector<128x128xf32>
    %39 = arith.addf %36, %38 : vector<128x128xf32>
    %cst_18 = arith.constant 0.000000e+00 : f32
    %40 = vector.broadcast %cst_18 : f32 to vector<128x128xf32>
    %41 = arith.maximumf %39, %40 : vector<128x128xf32>
    %42 = arith.truncf %41 : vector<128x128xf32> to vector<128x128xbf16>
    %c0_19 = arith.constant 0 : index
    %c0_20 = arith.constant 0 : index
    %43 = vector.load %arg10[%c0_19, %c0_20] : memref<128x128xbf16, #tpu.memory_space<vmem>>, vector<128x128xbf16>
    %cst_21 = arith.constant dense<0.000000e+00> : vector<128x128xf32>
    %44 = tpu.matmul %42, %43, %cst_21 {dimension_numbers = #tpu.dot_dimension_numbers<[1], [0], [0], [1], [0, 0, 1, 1], [], []>} : vector<128x128xbf16>, vector<128x128xbf16>, vector<128x128xf32> -> vector<128x128xf32>
    %c0_22 = arith.constant 0 : index
    %c0_23 = arith.constant 0 : index
    %c0_24 = arith.constant 0 : index
    %45 = vector.load %arg2[%c0_22, %c0_23, %c0_24] : memref<1x128x128xbf16, #tpu.memory_space<vmem>>, vector<1x128x128xbf16>
    %46 = vector.shape_cast %45 : vector<1x128x128xbf16> to vector<128x128xbf16>
    %47 = arith.extf %46 : vector<128x128xbf16> to vector<128x128xf32>
    %c0_25 = arith.constant 0 : index
    %c0_26 = arith.constant 0 : index
    %48 = vector.load %arg11[%c0_25, %c0_26] : memref<1x128xf32, #tpu.memory_space<vmem>>, vector<1x128xf32>
    %49 = vector.broadcast %48 : vector<1x128xf32> to vector<128x128xf32>
    %50 = arith.mulf %44, %49 : vector<128x128xf32>
    %c0_27 = arith.constant 0 : index
    %c0_28 = arith.constant 0 : index
    %51 = vector.load %arg12[%c0_27, %c0_28] : memref<1x128xf32, #tpu.memory_space<vmem>>, vector<1x128xf32>
    %52 = vector.broadcast %51 : vector<1x128xf32> to vector<128x128xf32>
    %53 = arith.addf %50, %52 : vector<128x128xf32>
    %54 = arith.addf %53, %47 : vector<128x128xf32>
    %cst_29 = arith.constant 0.000000e+00 : f32
    %55 = vector.broadcast %cst_29 : f32 to vector<128x128xf32>
    %56 = arith.maximumf %54, %55 : vector<128x128xf32>
    %57 = vector.shape_cast %56 : vector<128x128xf32> to vector<1x128x128xf32>
    %58 = arith.truncf %57 : vector<1x128x128xf32> to vector<1x128x128xbf16>
    %c0_30 = arith.constant 0 : index
    %c0_31 = arith.constant 0 : index
    %c0_32 = arith.constant 0 : index
    %59 = vector.load %arg13[%c0_30, %c0_31, %c0_32] : memref<1x128x128xbf16, #tpu.memory_space<vmem>>, vector<1x128x128xbf16>
    tpu.vector_store %arg13[%c0_30, %c0_31, %c0_32], %58 {strides = array<i32>} : memref<1x128x128xbf16, #tpu.memory_space<vmem>>, vector<1x128x128xbf16>,
    return
  }
  func.func @transform_0(%arg0: i32) -> (i32, i32, i32) {
    %c0_i32 = arith.constant 0 : i32
    %c0_i32_0 = arith.constant 0 : i32
    %c0_i32_1 = arith.constant 0 : i32
    return %arg0, %c0_i32, %c0_i32_0 : i32, i32, i32
  }
  func.func @transform_1(%arg0: i32) -> (i32, i32, i32) {
    %c0_i32 = arith.constant 0 : i32
    %c0_i32_0 = arith.constant 0 : i32
    %c0_i32_1 = arith.constant 0 : i32
    return %arg0, %c0_i32, %c0_i32_0 : i32, i32, i32
  }
  func.func @transform_2(%arg0: i32) -> (i32, i32) {
    %c0_i32 = arith.constant 0 : i32
    %c0_i32_0 = arith.constant 0 : i32
    %c0_i32_1 = arith.constant 0 : i32
    return %c0_i32, %c0_i32_0 : i32, i32
  }
  func.func @transform_3(%arg0: i32) -> (i32, i32) {
    %c0_i32 = arith.constant 0 : i32
    %c0_i32_0 = arith.constant 0 : i32
    %c0_i32_1 = arith.constant 0 : i32
    return %c0_i32, %c0_i32_0 : i32, i32
  }
  func.func @transform_4(%arg0: i32) -> (i32, i32) {
    %c0_i32 = arith.constant 0 : i32
    %c0_i32_0 = arith.constant 0 : i32
    %c0_i32_1 = arith.constant 0 : i32
    return %c0_i32, %c0_i32_0 : i32, i32
  }
  func.func @transform_5(%arg0: i32) -> (i32, i32) {
    %c0_i32 = arith.constant 0 : i32
    %c0_i32_0 = arith.constant 0 : i32
    %c0_i32_1 = arith.constant 0 : i32
    return %c0_i32, %c0_i32_0 : i32, i32
  }
  func.func @transform_6(%arg0: i32) -> (i32, i32) {
    %c0_i32 = arith.constant 0 : i32
    %c0_i32_0 = arith.constant 0 : i32
    %c0_i32_1 = arith.constant 0 : i32
    return %c0_i32, %c0_i32_0 : i32, i32
  }
  func.func @transform_7(%arg0: i32) -> (i32, i32) {
    %c0_i32 = arith.constant 0 : i32
    %c0_i32_0 = arith.constant 0 : i32
    %c0_i32_1 = arith.constant 0 : i32
    return %c0_i32, %c0_i32_0 : i32, i32
  }
  func.func @transform_8(%arg0: i32) -> (i32, i32) {
    %c0_i32 = arith.constant 0 : i32
    %c0_i32_0 = arith.constant 0 : i32
    %c0_i32_1 = arith.constant 0 : i32
    return %c0_i32, %c0_i32_0 : i32, i32
  }
  func.func @transform_9(%arg0: i32) -> (i32, i32) {
    %c0_i32 = arith.constant 0 : i32
    %c0_i32_0 = arith.constant 0 : i32
    %c0_i32_1 = arith.constant 0 : i32
    return %c0_i32, %c0_i32_0 : i32, i32
  }
  func.func @transform_10(%arg0: i32) -> (i32, i32) {
    %c0_i32 = arith.constant 0 : i32
    %c0_i32_0 = arith.constant 0 : i32
    %c0_i32_1 = arith.constant 0 : i32
    return %c0_i32, %c0_i32_0 : i32, i32
  }
  func.func @transform_11(%arg0: i32) -> (i32, i32) {
    %c0_i32 = arith.constant 0 : i32
    %c0_i32_0 = arith.constant 0 : i32
    %c0_i32_1 = arith.constant 0 : i32
    return %c0_i32, %c0_i32_0 : i32, i32
  }
  func.func @transform_12(%arg0: i32) -> (i32, i32, i32) {
    %c0_i32 = arith.constant 0 : i32
    %c0_i32_0 = arith.constant 0 : i32
    %c0_i32_1 = arith.constant 0 : i32
    return %arg0, %c0_i32, %c0_i32_0 : i32, i32, i32
  }
}

</mosaic_0001>

<bundles_post_ra>
// kernel: tpu_custom_call.1
= control target key start
LH: loop header
LB: loop body
LE: loop exit
PB: predicated region body
PF: predicated region fallthrough
CT: control target
= control target key end

     0   :  { %s4797_s0 = inlined_call_operand.vmem [shape: bf16[2,168,128], index: 0, kind: input, shape index: {}]   ;;  %s4798_s1 = inlined_call_operand.hbm [shape: bf16[2,128,128], index: 1, kind: input, shape index: {}]   ;;  %s4799_s2 = inlined_call_operand.vmem [shape: f32[168,1], index: 2, kind: input, shape index: {}]   ;;  %s4800_s3 = inlined_call_operand.hbm [shape: bf16[128,128], index: 3, kind: input, shape index: {}]   ;;  %s4801_s4 = inlined_call_operand.vmem [shape: f32[1,128], index: 4, kind: input, shape index: {}]   ;;  %s4802_s5 = inlined_call_operand.vmem [shape: f32[1,128], index: 5, kind: input, shape index: {}]   ;;  %s4803_s6 = inlined_call_operand.hbm [shape: bf16[1152,128], index: 6, kind: input, shape index: {}]   ;;  %s4804_s7 = inlined_call_operand.vmem [shape: f32[1,128], index: 7, kind: input, shape index: {}]   ;;  %s4805_s8 = inlined_call_operand.vmem [shape: f32[1,128], index: 8, kind: input, shape index: {}]   ;;  %s4806_s9 = inlined_call_operand.hbm [shape: bf16[128,128], index: 9, kind: input, shape index: {}]   ;;  %s4807_s10 = inlined_call_operand.vmem [shape: f32[1,128], index: 10, kind: input, shape index: {}]   ;;  %s4808_s11 = inlined_call_operand.vmem [shape: f32[1,128], index: 11, kind: input, shape index: {}]   ;;  %s4809_s12 = inlined_call_operand.hbm [shape: bf16[2,128,128], index: 12, kind: output, shape index: {}]  }
   0x1   :  { %4816 = sst [smem:[#allocation17_spill]] %s4805_s8 }
   0x2   :  { %4817 = sst [smem:[#allocation18_spill]] %s4807_s10 }
   0x3   :  { %4818 = sst [smem:[#allocation19_spill]] %s4808_s11 }
   0x4   :  { %4819 = sst [smem:[#allocation20_spill]] %s4809_s12 }
   0x5   :  { %17 = vsyncpa [#allocation3], 0 }
   0x6   :  { %19 = vsyncpa [#allocation3 + $0x1], 0 }
   0x7   :  { %20 = vsyncpa [#allocation6], 0 }
   0x8   :  { %21 = vsyncpa [#allocation9], 0 }
   0x9   :  { %22 = vsyncpa [#allocation4], 0 }
   0xa   :  { %24 = vsyncpa [#allocation4 + $0x1], 0  ;;  %s3895_s21 = smov 0   ;;  %s3897_s22 = smov 0  }
   0xb   :  { %s3899_s23 = smov 0   ;;  %s3901_s24 = smov 0  }
   0xc LB: > { %4820 = sst [smem:[#allocation15_spill]] %s3804_s21  ;;  %s3916_s25 = sadd.s32 4294967295, %s3816_s24   ;;  %s3816_s24 = sphi %s3901_s24, %s4848_s24   ;;  %s3812_s23 = sphi %s3899_s23, %s4847_s23   ;;  %s3808_s22 = sphi %s3897_s22, %s4846_s22   ;;  %s3804_s21 = sphi %s3895_s21, %s4845_s21  }
   0xd   : > { %s2749_s26 = sadd.s32 4294967294, %s3816_s24   ;;  %p76_p0 = scmp.ne.s32.totalorder %s3808_s22, %s3804_s21 }
   0xe   : > { %p4812_p1 = scmp.eq.s32.totalorder %s3916_s25, 0  ;;  %p316_p3 = scmp.eq.s32.totalorder %s2749_s26, 1 }
   0xf   : > { %p2750_p5 = scmp.ge.s32.totalorder %s3816_s24, 1  ;;  %p323_p7 = scmp.lt.s32.totalorder %s3816_s24, 3 }
  0x10   : > { %p3925_p4 = por %p4812_p1, %p76_p0  ;;  %p3930_p6 = por %p316_p3, %p76_p0 }
  0x11   : > { %p3935_p8 = pnand %p2750_p5, %p323_p7  ;;  %s3818_s30 = smov [#allocation5]  }
  0x12   : > { %s4821_s27 = scalar_select %p3925_p4, 1, 0 }
  0x13   : > { %s4822_s28 = scalar_select %p3930_p6, 1, 0 }
  0x14   : > { %s4824_s29 = scalar_select %p3935_p8, 1, 0 }
  0x15   : > { %4823 = sst [smem:[#allocation16_spill]] %s4822_s28  ;;  %s338_s13 = sshll.u32 %s3818_s30, 4  ;;  %s3939_s13 = int_to_ptr.vmem [resolvable:$true] %s338_s13 }
  0x16   : > { %p3459_p9 = pneg %p3935_p8  ;;  %s3819_s15 = smov [#allocation7]  }
  0x17   : > { %s357_s16 = sshll.u32 %s3819_s15, 4  ;;  %s3820_s17 = smov [#allocation8]   ;;  %s3950_s16 = int_to_ptr.vmem [resolvable:$true] %s357_s16 }
  0x18   : > { %p3946_p11 = pnand %p3459_p9, %p4812_p1  ;;  %s3952_s18 = sshll.u32 %s3820_s17, 4  ;;  %s377_s18 = int_to_ptr.vmem [resolvable:$true] %s3952_s18 }
  0x19   : > { %s3628_s26 = scalar_lea.hbm %s4800_s3, 1024 }
  0x1a   : > { %p3629_p12 = scmp.ne.s32.totalorder %s4800_s3, %s3628_s26  ;;  %p3962_p13 = pneg %p3946_p11 }
  0x1b   : > { %p3635_p5 = scmp.lt.u32.totalorder %s3628_s26, %s4800_s3 }
  0x1c   : > { %p3631_p0 = pnand %p3962_p13, %p3629_p12 }
  0x1e   : > { %p3632_p3 = pneg %p3631_p0 }
  0x20   : > { %p3637_p7 = pnand %p3635_p5, %p3632_p3 }
  0x22   : > { %3640 = shalt.err (!%p3637_p7)
}
  0x23   : > { %s3641_s28 = scalar_lea.vmem %s3939_s13, 1024  ;;  %p3649_p2 = scmp.lt.s32.totalorder %s3939_s13, %s3939_s13 }
  0x24   : > { %p3642_p9 = scmp.ne.s32.totalorder %s3939_s13, %s3641_s28  ;;  %p3650_p6 = scmp.lt.s32.totalorder %s3641_s28, %s3641_s28 }
  0x26   : > { %p3644_p10 = pnand %p3642_p9, %p3962_p13  ;;  %p3651_p12 = por %p3650_p6, %p3649_p2 }
  0x28   : > { %p3645_p1 = pneg %p3644_p10 }
  0x2a   : > { %p3652_p0 = pnand %p3651_p12, %p3645_p1 }
  0x2c   : > { %3655 = shalt.err (!%p3652_p0)
}
  0x2d   : > { %s3821_s19 = smov 64   ;;  %s3822_s20 = smov 4  }
  0x2e   : > { %3462 = dma.hbm_to_vmem [thread:$0]  (!%p3946_p11), %s4800_s3, 1024, %s3939_s13, [#allocation6], %s3821_s19, %s3821_s19, %s3822_s20  }
  0x2f   : > { %s3656_s28 = scalar_lea.hbm %s4803_s6, 9216 }
  0x30   : > { %p3657_p1 = scmp.ne.s32.totalorder %s4803_s6, %s3656_s28  ;;  %p3663_p10 = scmp.lt.u32.totalorder %s3656_s28, %s4803_s6 }
  0x32   : > { %p3659_p2 = pnand %p3657_p1, %p3962_p13 }
  0x34   : > { %p3660_p6 = pneg %p3659_p2 }
  0x36   : > { %p3665_p3 = pnand %p3663_p10, %p3660_p6 }
  0x38   : > { %3668 = shalt.err (!%p3665_p3)
}
  0x39   : > { %s3669_s13 = scalar_lea.vmem %s3950_s16, 9216  ;;  %p3677_p12 = scmp.lt.s32.totalorder %s3950_s16, %s3950_s16 }
  0x3a   : > { %p3670_p5 = scmp.ne.s32.totalorder %s3950_s16, %s3669_s13  ;;  %p3678_p0 = scmp.lt.s32.totalorder %s3669_s13, %s3669_s13 }
  0x3c   : > { %p3672_p7 = pnand %p3670_p5, %p3962_p13  ;;  %p3679_p1 = por %p3678_p0, %p3677_p12 }
  0x3e   : > { %p3673_p9 = pneg %p3672_p7 }
  0x40   : > { %p3680_p2 = pnand %p3679_p1, %p3673_p9 }
  0x42   : > { %3683 = shalt.err (!%p3680_p2)
}
  0x43   : > { %3465 = dma.hbm_to_vmem [thread:$0]  (!%p3946_p11), %s4803_s6, 9216, %s3950_s16, [#allocation6], %s3821_s19, %s3821_s19, %s3822_s20  }
  0x44   : > { %s3684_s26 = scalar_lea.hbm %s4806_s9, 1024 }
  0x45   : > { %p3685_p6 = scmp.ne.s32.totalorder %s4806_s9, %s3684_s26  ;;  %p3691_p5 = scmp.lt.u32.totalorder %s3684_s26, %s4806_s9 }
  0x47   : > { %p3687_p10 = pnand %p3685_p6, %p3962_p13 }
  0x49   : > { %p3688_p3 = pneg %p3687_p10 }
  0x4b   : > { %p3693_p7 = pnand %p3691_p5, %p3688_p3 }
  0x4d   : > { %3696 = shalt.err (!%p3693_p7)
}
  0x4e   : > { %s3697_s13 = scalar_lea.vmem %s377_s18, 1024  ;;  %p3705_p1 = scmp.lt.s32.totalorder %s377_s18, %s377_s18 }
  0x4f   : > { %p3698_p9 = scmp.ne.s32.totalorder %s377_s18, %s3697_s13  ;;  %p3706_p2 = scmp.lt.s32.totalorder %s3697_s13, %s3697_s13 }
  0x51   : > { %p3700_p12 = pnand %p3698_p9, %p3962_p13  ;;  %p3707_p4 = por %p3706_p2, %p3705_p1 }
  0x53   : > { %p3701_p0 = pneg %p3700_p12 }
  0x55   : > { %p3708_p8 = pnand %p3707_p4, %p3701_p0 }
  0x57   : > { %3711 = shalt.err (!%p3708_p8)
}
  0x58   : > { %3468 = dma.hbm_to_vmem [thread:$0]  (!%p3946_p11), %s4806_s9, 1024, %s377_s18, [#allocation9], %s3821_s19, %s3821_s19, %s3822_s20  }
  0x59   : > { %s4035_s21 = sadd.s32 1, %s3816_s24   ;;  %s63_s10 = sadd.s32 1, %s3812_s23 }
  0x5a   : > { %s60_s14 = ssub.s32 %s3816_s24, %s4035_s21  ;;  %p70_p8 = scmp.ne.s32.totalorder %s3812_s23, %s3808_s22 }
  0x5b   : > { %p61_p4 = scmp.eq.s32.totalorder %s60_s14, 0  ;;  %p71_p13 = scmp.eq.s32.totalorder %s3816_s24, 0 }
  0x5c   : > { %p3480_p6 = scmp.lt.s32.totalorder %s3816_s24, 2  ;;  %p4827_p3 = scmp.eq.s32.totalorder %s3916_s25, 1 }
  0x5d   : > { %s4045_s11 = scalar_select %p61_p4, %s3812_s23, %s63_s10  }
  0x5e   : > { %p72_p10 = por %p71_p13, %p70_p8  ;;  %p4049_p5 = por %p4827_p3, %p70_p8 }
  0x5f   : > { %s404_s26 = sand.u32 1, %s3812_s23   ;;  %s2891_s30 = sshll.u32 %s3816_s24, 10 }
  0x60   : > { %s2755_s18 = sshll.u32 %s404_s26, 6  ;;  %s4058_s28 = scalar_lea.hbm %s4798_s1, %s2891_s30 }
  0x61   : > { %s408_s13 = scalar_lea.vmem [#allocation2], %s2755_s18  ;;  %p4060_p11 = pnand %p3480_p6, %p72_p10 }
  0x62   : > { %s415_s16 = sshll.u32 %s408_s13, 4  ;;  %s4066_s14 = scalar_lea.sflag [#allocation3], %s404_s26  ;;  %s4064_s16 = int_to_ptr.vmem [resolvable:$true] %s415_s16 }
  0x63   : > { %s3712_s10 = scalar_lea.hbm %s4058_s28, 1024  ;;  %p3714_p9 = pneg %p4060_p11 }
  0x64   : > { %p3713_p7 = scmp.ne.s32.totalorder %s4058_s28, %s3712_s10  ;;  %s3717_s15 = scalar_lea.hbm %s4798_s1, 2048 }
  0x65   : > { %p3718_p1 = scmp.lt.u32.totalorder %s4058_s28, %s4798_s1  ;;  %p3719_p2 = scmp.lt.u32.totalorder %s3717_s15, %s3712_s10 }
  0x66   : > { %p3715_p12 = pnand %p3714_p9, %p3713_p7  ;;  %p3721_p8 = scmp.lt.u32.totalorder %s3712_s10, %s4058_s28 }
  0x67   : > { %p3720_p4 = por %p3719_p2, %p3718_p1 }
  0x68   : > { %p3716_p0 = pneg %p3715_p12 }
  0x69   : > { %p3722_p13 = por %p3721_p8, %p3720_p4 }
  0x6b   : > { %p3723_p6 = pnand %p3722_p13, %p3716_p0 }
  0x6d   : > { %3726 = shalt.err (!%p3723_p6)
}
  0x6e   : > { %s3727_s26 = scalar_lea.vmem %s4064_s16, 1024  ;;  %s3823_s30 = smov [#allocation2]  }
  0x6f   : > { %p3728_p10 = scmp.ne.s32.totalorder %s4064_s16, %s3727_s26  ;;  %s3732_s18 = sshll.u32 %s3823_s30, 4  ;;  %s3733_s18 = int_to_ptr.vmem [resolvable:$false] %s3732_s18 }
  0x70   : > { %s3734_s17 = scalar_lea.vmem %s3733_s18, 2048  ;;  %p3735_p12 = scmp.lt.s32.totalorder %s4064_s16, %s3733_s18 }
  0x71   : > { %p3730_p3 = pnand %p3728_p10, %p3714_p9  ;;  %p3736_p1 = scmp.lt.s32.totalorder %s3734_s17, %s3727_s26 }
  0x73   : > { %p3731_p7 = pneg %p3730_p3  ;;  %p3737_p2 = por %p3736_p1, %p3735_p12 }
  0x75   : > { %p3738_p4 = pnand %p3737_p2, %p3731_p7 }
  0x77   : > { %3741 = shalt.err (!%p3738_p4)
}
  0x78   : > { %3472 = dma.hbm_to_vmem [thread:$0]  (!%p4060_p11), %s4058_s28, 1024, %s4064_s16, %s4066_s14, %s3821_s19, %s3821_s19, %s3822_s20  }
  0x79   : > { %p4830_p9 = scmp.ne.s32.totalorder %s4824_s29, 0 }
  0x7a   : > { %s4100_s10 = sand.u32 (!%p4830_p9), 1, %s3808_s22   ;;  %p4831_p0 = scmp.ne.s32.totalorder (!%p4830_p9), %s4821_s27, 0 }
  0x7b   : > { %427 = sbr.rel (%p4830_p9) target bundleno = 1063 (0x427), region = 68  ;;  %s2759_s15 = sshll.u32 (!%p4830_p9), %s4100_s10, 6 }
  0x7c   : > { %s430_s13 = scalar_lea.sflag (!%p4830_p9), [#allocation3], %s4100_s10  ;;  %s4106_s8 = scalar_lea.vmem (!%p4830_p9), [#allocation2], %s2759_s15 }
  0x82   : > { %3787 = dma.done.wait (%p4831_p0), %s430_s13, 1024  }
  0x83   : > { %3789 = vsyncadd (%p4831_p0), %s430_s13, 4294966272  ;;  %p4832_p11 = scmp.eq.s32.totalorder %s3916_s25, 0 }
  0x85   : > { %3791 = dma.done.wait (%p4832_p11), [#allocation6], 10240   ;;  %p4833_p8 = pmov %p4832_p11 }
  0x87   : > { %3793 = vsyncadd (%p4833_p8), [#allocation6], 4294957056  ;;  %p4834_p13 = pmov %p4833_p8 }
  0x88   : > { %p4835_p6 = pmov %p4833_p8 }
  0x89   : > { %3795 = dma.done.wait (%p4834_p13), [#allocation9], 1024  }
  0x8a   : > { %3797 = vsyncadd (%p4835_p6), [#allocation9], 4294966272  ;;  %v3824_v0 = vmov 0.0   ;;  %vm3825_vm0 = vmmov 0   ;;  %p491_p10 = scmp.lt.s32.totalorder %s3916_s25, 1  ;;  %v3826_v1 = vmov 0  }
  0x8b   : > { %3302 = vmatprep.subr.bf16.mxu0 %v3824_v0  ;;  %3318 = vmatprep.mubr.msk.bf16.mxu0 %vm3825_vm0, %v3824_v0  ;;  %v3529_v2 = vld [vmem:[#allocation5] sm:$0xff]   ;;  %v3530_v3 = vld [vmem:[#allocation5 + $0x8] sm:$0xff]   ;;  %v3531_v4 = vld [vmem:[#allocation5 + $0x10] sm:$0xff]   ;;  %vm1087_vm1 = vcmask 1046528   ;;  %vm1001_vm2 = vsmask.f32 7424 }
  0x8c   : > { %3527 = vset.pattern.permute.xlu0 %v3826_v1  ;;  %3528 = vset.pattern.permute.xlu1 %v3826_v1  ;;  %s492_s27 = scalar_select %p491_p10, %s3916_s25, 1  ;;  %v3532_v5 = vld [vmem:[#allocation5 + $0x18] sm:$0xff]   ;;  %v3533_v6 = vld [vmem:[#allocation5 + $0x20] sm:$0xff]   ;;  %v845_v8 = vld [vmem:[%s4799_s2 + $0x10] sm:$0xff] }
  0x8d   : > { %3303 = vmatpush3.bf16.msra.mxu0 %v3529_v2  ;;  %v843_v7 = vld [vmem:[%s4799_s2] sm:$0xff]  ;;  %v844_v9 = vld [vmem:[%s4799_s2 + $0x8] sm:$0xff]  ;;  %876 = vperm.xlu1 %3528, %v845_v8   ;;  %v846_v11 = vld [vmem:[%s4799_s2 + $0x18] sm:$0xff]  ;;  %s4836_s17 = sld [smem:[#allocation17_spill]]  ;;  %s4838_s20 = sld [smem:[#allocation19_spill]] }
  0x8e   : > { %3304 = vmatprep.subr.bf16.mxu0 %v3824_v0  ;;  %s3442_s29 = smul.u32 84, %s492_s27  ;;  %866 = vperm.xlu0 %3527, %v843_v7   ;;  %v3534_v10 = vld [vmem:[#allocation5 + $0x28] sm:$0xff]   ;;  %v847_v12 = vld [vmem:[%s4799_s2 + $0x20] sm:$0xff]  ;;  %v3535_v13 = vld [vmem:[#allocation5 + $0x30] sm:$0xff]   ;;  %s4706_s16 = scalar_lea.vmem [#allocation10], %s2759_s15 }
  0x8f   : > { %v848_v14 = vld [vmem:[%s4799_s2 + $0x28] sm:$0xff]  ;;  %v3536_v15 = vld [vmem:[#allocation5 + $0x38] sm:$0xff]   ;;  %v849_v16 = vld [vmem:[%s4799_s2 + $0x30] sm:$0xff]  ;;  %s2908_s15 = sshll.u32 %s3916_s25, 10  ;;  %s4839_s30 = sld [smem:[#allocation20_spill]] }
  0x90   : > { %s4130_s28 = scalar_lea.vmem %s4797_s0, %s3442_s29  ;;  %v850_v17 = vld [vmem:[%s4799_s2 + $0x38] sm:$0xff]  ;;  %v851_v19 = vld [vmem:[%s4799_s2 + $0x40] sm:$0xff]  ;;  %v852_v20 = vld [vmem:[%s4799_s2 + $0x48] sm:$0xff]  ;;  %s4837_s29 = sld [smem:[#allocation18_spill]] }
  0x91   : > { %3305 = vmatpush3.bf16.msra.mxu0 %v3530_v3  ;;  %881 = vperm.xlu1 %3528, %v846_v11   ;;  %v3537_v18 = vld [vmem:[%s4130_s28] sm:$0xff]   ;;  %v853_v21 = vld [vmem:[%s4799_s2 + $0x50] sm:$0xff]  ;;  %v854_v22 = vld [vmem:[%s4799_s2 + $0x58] sm:$0xff]  ;;  %s2622_s25 = scalar_lea.sflag [#allocation4], %s4100_s10  ;;  %s3827_s13 = smov [#allocation10]  }
  0x92   : > { %3306 = vmatprep.subr.bf16.mxu0 %v3824_v0  ;;  %871 = vperm.xlu0 %3527, %v844_v9   ;;  %v3538_v23 = vld [vmem:[%s4130_s28 + $0x8] sm:$0xff]   ;;  %v855_v24 = vld [vmem:[%s4799_s2 + $0x60] sm:$0xff]  ;;  %v857_v27 = vld [vmem:[%s4799_s2 + $0x70] sm:$0xff]  ;;  %s3746_s27 = sshll.u32 %s3827_s13, 4  ;;  %s3747_s27 = int_to_ptr.vmem [resolvable:$false] %s3746_s27 }
  0x93   : > { %v3548_v25 = vld [vmem:[#allocation7 + $0x40] sm:$0xff]   ;;  %v856_v26 = vld [vmem:[%s4799_s2 + $0x68] sm:$0xff]  ;;  %v858_v30 = vld [vmem:[%s4799_s2 + $0x78] sm:$0xff] }
  0x94   : > { %3014 = vmatprep.subr.bf16.mxu1 %v3548_v25  ;;  %v3549_v28 = vld [vmem:[#allocation7] sm:$0xff]   ;;  %v3550_v29 = vld [vmem:[#allocation7 + $0x48] sm:$0xff]   ;;  %v3539_v31 = vld [vmem:[%s4130_s28 + $0x10] sm:$0xff]  }
  0x95   : > { %3307 = vmatpush3.bf16.msra.mxu0 %v3531_v4  ;;  %891 = vperm.xlu1 %3528, %v848_v14   ;;  %v859_v32 = vld [vmem:[%s4799_s2 + $0x80] sm:$0xff]  ;;  %v3551_v33 = vld [vmem:[#allocation7 + $0x8] sm:$0xff]   ;;  %v861_v35 = vld [vmem:[%s4799_s2 + $0x90] sm:$0xff]  ;;  %s4749_s18 = scalar_lea.hbm %s4839_s30, %s2908_s15 }
  0x96   : > { %3308 = vmatprep.subr.bf16.mxu0 %v3824_v0  ;;  %886 = vperm.xlu0 %3527, %v847_v12   ;;  %v860_v34 = vld [vmem:[%s4799_s2 + $0x88] sm:$0xff]  ;;  %v862_v36 = vld [vmem:[%s4799_s2 + $0x98] sm:$0xff]  ;;  %v863_v38 = vld [vmem:[%s4799_s2 + $0xa0] sm:$0xff] }
  0x97   : > { %3015 = vmatpush3.bf16.msra.mxu1 %v3549_v28  ;;  %v3540_v37 = vld [vmem:[%s4130_s28 + $0x18] sm:$0xff]   ;;  %v3541_v39 = vld [vmem:[%s4130_s28 + $0x20] sm:$0xff]   ;;  %v3542_v40 = vld [vmem:[%s4130_s28 + $0x28] sm:$0xff]  }
  0x98   : > { %3016 = vmatprep.subr.bf16.mxu1 %v3550_v29  ;;  %v3543_v41 = vld [vmem:[%s4130_s28 + $0x30] sm:$0xff]   ;;  %v3544_v42 = vld [vmem:[%s4130_s28 + $0x38] sm:$0xff]   ;;  %v3545_v43 = vld [vmem:[%s4130_s28 + $0x40] sm:$0xff]  }
  0x99   : > { %3309 = vmatpush3.bf16.msra.mxu0 %v3532_v5  ;;  %901 = vperm.xlu1 %3528, %v850_v17   ;;  %v3546_v44 = vld [vmem:[%s4130_s28 + $0x48] sm:$0xff]   ;;  %v3547_v45 = vld [vmem:[%s4130_s28 + $0x50] ss:$0 sps:$4 sm:$0xff]   ;;  %v3553_v46 = vld [vmem:[#allocation7 + $0x140] sm:$0xff]  }
  0x9a   : > { %3310 = vmatprep.subr.bf16.mxu0 %v3824_v0  ;;  %896 = vperm.xlu0 %3527, %v849_v16   ;;  %v3552_v47 = vld [vmem:[#allocation7 + $0x50] sm:$0xff]   ;;  %v3555_v48 = vld [vmem:[#allocation7 + $0x100] sm:$0xff]   ;;  %v3557_v50 = vld [vmem:[#allocation7 + $0x148] sm:$0xff]  }
  0x9b   : > { %3017 = vmatpush3.bf16.msra.mxu1 %v3551_v33  ;;  %v3554_v49 = vld [vmem:[#allocation7 + $0x10] sm:$0xff]   ;;  %v3556_v51 = vld [vmem:[#allocation7 + $0x58] sm:$0xff]   ;;  %v3559_v52 = vld [vmem:[#allocation7 + $0x108] sm:$0xff]  }
  0x9c   : > { %3018 = vmatprep.subr.bf16.mxu1 %v3552_v47  ;;  %v3558_v53 = vld [vmem:[#allocation7 + $0x18] sm:$0xff]   ;;  %v3561_v54 = vld [vmem:[#allocation7 + $0x150] sm:$0xff]   ;;  %v3560_v55 = vld [vmem:[#allocation7 + $0x60] sm:$0xff]  }
  0x9d   : > { %3311 = vmatpush3.bf16.msra.mxu0 %v3533_v6  ;;  %911 = vperm.xlu1 %3528, %v852_v20   ;;  %v3563_v56 = vld [vmem:[#allocation7 + $0x110] sm:$0xff]   ;;  %v3562_v57 = vld [vmem:[#allocation7 + $0x20] sm:$0xff]   ;;  %v3565_v58 = vld [vmem:[#allocation7 + $0x158] sm:$0xff]  }
  0x9e   : > { %3312 = vmatprep.subr.bf16.mxu0 %v3824_v0  ;;  %906 = vperm.xlu0 %3527, %v851_v19   ;;  %v3564_v59 = vld [vmem:[#allocation7 + $0x68] sm:$0xff]   ;;  %v3567_v60 = vld [vmem:[#allocation7 + $0x118] sm:$0xff]   ;;  %v3569_v62 = vld [vmem:[#allocation7 + $0x160] sm:$0xff]  }
  0x9f   : > { %3019 = vmatpush3.bf16.msra.mxu1 %v3554_v49  ;;  %v3566_v61 = vld [vmem:[#allocation7 + $0x28] sm:$0xff]   ;;  %v3568_v63 = vld [vmem:[#allocation7 + $0x70] sm:$0xff]   ;;  %v3572_v3 = vld [vmem:[#allocation7 + $0x78] sm:$0xff]  }
  0xa0   : > { %3020 = vmatprep.subr.bf16.mxu1 %v3556_v51  ;;  %v3570_v1 = vld [vmem:[#allocation7 + $0x30] sm:$0xff]   ;;  %v3573_v2 = vld [vmem:[#allocation7 + $0x168] sm:$0xff]   ;;  %v3574_v5 = vld [vmem:[#allocation7 + $0x38] sm:$0xff]  }
  0xa1   : > { %3313 = vmatpush3.bf16.msra.mxu0 %v3534_v10  ;;  %921 = vperm.xlu1 %3528, %v854_v22   ;;  %v3575_v4 = vld [vmem:[#allocation7 + $0x128] sm:$0xff]   ;;  %v3577_v6 = vld [vmem:[#allocation7 + $0x170] sm:$0xff]   ;;  %v3580_v8 = vld [vmem:[#allocation7 + $0x178] sm:$0xff]  }
  0xa2   : > { %3314 = vmatprep.subr.bf16.mxu0 %v3824_v0  ;;  %916 = vperm.xlu0 %3527, %v853_v21   ;;  %v3579_v7 = vld [vmem:[#allocation7 + $0x130] sm:$0xff]   ;;  %v3581_v9 = vld [vmem:[#allocation7 + $0x138] sm:$0xff]   ;;  %v3576_v10 = vld [vmem:[#allocation7 + $0xc0] sm:$0xff]  }
  0xa3   : > { %3021 = vmatpush3.bf16.msra.mxu1 %v3558_v53  ;;  %v4231_v11 = vld [vmem:[#allocation7 + $0x200] sm:$0xff]  }
  0xa4   : > { %3022 = vmatprep.subr.bf16.mxu1 %v3560_v55  ;;  %v4237_v12 = vld [vmem:[%s4801_s4] ss:$0 sm:$0xff] }
  0xa5   : > { %3315 = vmatpush3.bf16.msra.mxu0 %v3535_v13  ;;  %931 = vperm.xlu1 %3528, %v856_v26   ;;  %v4242_v14 = vld [vmem:[%s4802_s5] ss:$0 sm:$0xff] }
  0xa6   : > { %3316 = vmatprep.subr.bf16.mxu0 %v3824_v0  ;;  %926 = vperm.xlu0 %3527, %v855_v24  }
  0xa7   : > { %3023 = vmatpush3.bf16.msra.mxu1 %v3562_v57 }
  0xa8   : > { %3024 = vmatprep.subr.bf16.mxu1 %v3564_v59 }
  0xa9   : > { %3317 = vmatpush3.bf16.msra.mxu0 %v3536_v15  ;;  %941 = vperm.xlu1 %3528, %v858_v30  }
  0xaa   : > { %936 = vperm.xlu0 %3527, %v857_v27   ;;  %3142 = vmatprep.subr.bf16.mxu0 %v3553_v46 }
  0xab   : > { %3025 = vmatpush3.bf16.msra.mxu1 %v3566_v61 }
  0xac   : > { %3319 = vmatmul.mubr.bf16.vlgmr.msra.gmra.mrb[0].mxu0 %v3537_v18  ;;  %3026 = vmatprep.subr.bf16.mxu1 %v3568_v63 }
  0xad   : > { %3322 = vmatprep.mubr.msk.bf16.mxu0 %vm3825_vm0, %v3824_v0  ;;  %951 = vperm.xlu1 %3528, %v860_v34  }
  0xae   : > { %946 = vperm.xlu0 %3527, %v859_v32   ;;  %3143 = vmatpush3.bf16.msra.mxu0 %v3555_v48 }
  0xaf   : > { %3144 = vmatprep.subr.bf16.mxu0 %v3557_v50  ;;  %3027 = vmatpush3.bf16.msra.mxu1 %v3570_v1 }
  0xb0   : > { %3028 = vmatprep.subr.bf16.mxu1 %v3572_v3 }
  0xb1   : > { %961 = vperm.xlu1 %3528, %v862_v36  }
  0xb2   : > { %956 = vperm.xlu0 %3527, %v861_v35   ;;  %3145 = vmatpush3.bf16.msra.mxu0 %v3559_v52 }
  0xb3   : > { %3146 = vmatprep.subr.bf16.mxu0 %v3561_v54  ;;  %3029 = vmatpush3.bf16.msra.mxu1 %v3574_v5 }
  0xb4   : > { %3323 = vmatmul.mubr.bf16.gmra.mrb[4].mxu0 %v3538_v23  ;;  %3078 = vmatprep.subr.bf16.mxu1 %v3576_v10 }
  0xb5   : > { %3326 = vmatprep.mubr.msk.bf16.mxu0 %vm3825_vm0, %v3824_v0 }
  0xb6   : > { %966 = vperm.xlu0 %3527, %v863_v38   ;;  %3147 = vmatpush3.bf16.msra.mxu0 %v3563_v56 }
  0xb7   : > { %3148 = vmatprep.subr.bf16.mxu0 %v3565_v58 }
  0xba   : > { %3149 = vmatpush3.bf16.msra.mxu0 %v3567_v60 }
  0xbb   : > { %3150 = vmatprep.subr.bf16.mxu0 %v3569_v62 }
  0xbc   : > { %3327 = vmatmul.mubr.bf16.gmra.mrb[8].mxu0 %v3539_v31 }
  0xbd   : > { %3330 = vmatprep.mubr.msk.bf16.mxu0 %vm3825_vm0, %v3824_v0 }
  0xc4   : > { %3331 = vmatmul.mubr.bf16.gmra.mrb[12].mxu0 %v3540_v37 }
  0xc5   : > { %3334 = vmatprep.mubr.msk.bf16.mxu0 %vm3825_vm0, %v3824_v0 }
  0xcc   : > { %3335 = vmatmul.mubr.bf16.gmra.mrb[16].mxu0 %v3541_v39 }
  0xcd   : > { %3338 = vmatprep.mubr.msk.bf16.mxu0 %vm3825_vm0, %v3824_v0 }
  0xd4   : > { %3339 = vmatmul.mubr.bf16.gmra.mrb[20].mxu0 %v3542_v40 }
  0xd5   : > { %3342 = vmatprep.mubr.msk.bf16.mxu0 %vm3825_vm0, %v3824_v0 }
  0xdc   : > { %3343 = vmatmul.mubr.bf16.gmra.mrb[24].mxu0 %v3543_v41 }
  0xdd   : > { %3346 = vmatprep.mubr.msk.bf16.mxu0 %vm3825_vm0, %v3824_v0 }
  0xe4   : > { %3347 = vmatmul.mubr.bf16.gmra.mrb[28].mxu0 %v3544_v42 }
  0xe5   : > { %3350 = vmatprep.mubr.msk.bf16.mxu0 %vm3825_vm0, %v3824_v0 }
  0xec   : > { %3351 = vmatmul.mubr.bf16.gmra.mrb[32].mxu0 %v3545_v43 }
  0xed   : > { %3354 = vmatprep.mubr.msk.bf16.mxu0 %vm3825_vm0, %v3824_v0 }
  0xf4   : > { %3355 = vmatmul.mubr.bf16.gmra.mrb[36].mxu0 %v3546_v44 }
  0xf5   : > { %3358 = vmatprep.mubr.msk.bf16.mxu0 %vm3825_vm0, %v3824_v0  ;;  %v3571_v0 = vld [vmem:[#allocation7 + $0x120] sm:$0xff]  }
  0xf6   : > { %3151 = vmatpush3.bf16.msra.mxu0 %v3571_v0 }
  0xf7   : > { %3152 = vmatprep.subr.bf16.mxu0 %v3573_v2  ;;  %v3578_v2 = vld [vmem:[#allocation7 + $0x80] sm:$0xff]  }
  0xfa   : > { %3153 = vmatpush3.bf16.msra.mxu0 %v3575_v4 }
  0xfb   : > { %3154 = vmatprep.subr.bf16.mxu0 %v3577_v6 }
  0xfc   : > { %3359 = vmatmul.mubr.bf16.gmra.mrb[40].mxu0 %v3547_v45 }
  0xfe   : > { %3155 = vmatpush3.bf16.msra.mxu0 %v3579_v7 }
  0xff   : > { %3156 = vmatprep.subr.bf16.mxu0 %v3580_v8  ;;  %v3582_v8 = vld [vmem:[#allocation7 + $0xc8] sm:$0xff]  }
 0x102   : > { %3157 = vmatpush3.bf16.msra.mxu0 %v3581_v9 }
 0x103   : > { %3362 = vmatprep.subr.bf16.mxu0 %v4231_v11 }
 0x10c   : > { %v877_v31 = vpop.permute.xlu1 %876 }
 0x10d   : > { %v867_v17 = vpop.permute.xlu0 %866 }
 0x110   : > { %v882_v41 = vpop.permute.xlu1 %881 }
 0x111   : > { %v872_v25 = vpop.permute.xlu0 %871 }
 0x114   : > { %v892_v0 = vpop.permute.xlu1 %891 }
 0x115   : > { %v887_v59 = vpop.permute.xlu0 %886 }
 0x17f   : > { %v680_v13 = vpop.f32.mrb[0].mxu0 }
 0x180   : > { %v773_v15 = vmul.f32 %v4237_v12, %v680_v13  ;;  %v3320_v16 = vpop.f32.mrb[1].mxu0 }
 0x181   : > { %v683_v18 = vpop.f32.mrb[2].mxu0 }
 0x182   : > { %v801_v19 = vadd.f32 %v4242_v14, %v773_v15  ;;  %v774_v20 = vmul.f32 %v4237_v12, %v683_v18  ;;  %v3321_v21 = vpop.f32.mrb[3].mxu0  ;;  %v3583_v18 = vld [vmem:[#allocation7 + $0x88] sm:$0xff]  }
 0x184   : > { %v822_v22 = vmax.f32 %v801_v19, 0.0  ;;  %v802_v23 = vadd.f32 %v4242_v14, %v774_v20 }
 0x186   : > { %v823_v24 = vmax.f32 %v802_v23, 0.0  ;;  %v969_v27 = vmul.f32 %v867_v17, %v822_v22  ;;  %v3584_v23 = vld [vmem:[#allocation7 + $0xd0] sm:$0xff]  }
 0x187   : > { %v688_v26 = vpop.f32.mrb[4].mxu0 }
 0x188   : > { %v970_v28 = vmul.f32 %v872_v25, %v823_v24  ;;  %v775_v29 = vmul.f32 %v4237_v12, %v688_v26  ;;  %v3324_v30 = vpop.f32.mrb[5].mxu0  ;;  %v897_v24 = vpop.permute.xlu0 %896 }
 0x189   : > { %v691_v32 = vpop.f32.mrb[6].mxu0 }
 0x18a   : > { %v990_v33 = vpack.c.bf16 %v970_v28, %v969_v27  ;;  %v803_v34 = vadd.f32 %v4242_v14, %v775_v29  ;;  %v776_v35 = vmul.f32 %v4237_v12, %v691_v32  ;;  %v3325_v36 = vpop.f32.mrb[7].mxu0  ;;  %v902_v29 = vpop.permute.xlu1 %901  ;;  %v3593_v32 = vld [vmem:[#allocation7 + $0x208] sm:$0xff]  }
 0x18c   : > { %v824_v37 = vmax.f32 %v803_v34, 0.0  ;;  %v804_v38 = vadd.f32 %v4242_v14, %v776_v35  ;;  %v1005_v40 = vshll.u32 %v990_v33, 16  ;;  %v1003_v53 = vshrl.u32 %v990_v33, 16 }
 0x18d   : > { %v1088_v54 = vrot.slane %v990_v33, 1 }
 0x18e   : > { %v825_v39 = vmax.f32 %v804_v38, 0.0  ;;  %v971_v43 = vmul.f32 %v877_v31, %v824_v37  ;;  %v1007_v52 = vrot.slane %v1005_v40, 1  ;;  %v3585_v31 = vld [vmem:[#allocation7 + $0x90] sm:$0xff]   ;;  %v3586_v38 = vld [vmem:[#allocation7 + $0xd8] sm:$0xff]  }
 0x18f   : > { %v696_v42 = vpop.f32.mrb[8].mxu0 }
 0x190   : > { %v972_v44 = vmul.f32 %v882_v41, %v825_v39  ;;  %v777_v45 = vmul.f32 %v4237_v12, %v696_v42  ;;  %v3328_v46 = vpop.f32.mrb[9].mxu0  ;;  %v1008_v61 = vor.u32 %v1007_v52, %v1003_v53  ;;  %v907_v52 = vpop.permute.xlu0 %906 }
 0x191   : > { %v699_v47 = vpop.f32.mrb[10].mxu0 }
 0x192   : > { %v4253_v48 = vpack.c.bf16 %v972_v44, %v971_v43  ;;  %v805_v49 = vadd.f32 %v4242_v14, %v777_v45  ;;  %v778_v50 = vmul.f32 %v4237_v12, %v699_v47  ;;  %v3329_v51 = vpop.f32.mrb[11].mxu0  ;;  %v3587_v45 = vld [vmem:[#allocation7 + $0x98] sm:$0xff]  }
 0x193   : > { %v3588_v51 = vld [vmem:[#allocation7 + $0xe0] sm:$0xff]  }
 0x194   : > { %v826_v55 = vmax.f32 %v805_v49, 0.0  ;;  %v806_v56 = vadd.f32 %v4242_v14, %v778_v50  ;;  %v1010_v57 = vshll.u32 %v4253_v48, 16  ;;  %v1089_v58 = vrot.slane %v4253_v48, 1 }
 0x195   : > { %v1014_v17 = vshrl.u32 %v4253_v48, 16 }
 0x196   : > { %v827_v60 = vmax.f32 %v806_v56, 0.0  ;;  %v1012_v62 = vrot.slane %v1010_v57, 1  ;;  %v4261_v63 = vsel %vm1087_vm1, %v1088_v54, %v1089_v58  ;;  %v973_v3 = vmul.f32 %v887_v59, %v826_v55  ;;  %v3595_v56 = vld [vmem:[#allocation7 + $0x210] sm:$0xff]   ;;  %v912_v57 = vpop.permute.xlu1 %911  ;;  %v3589_v59 = vld [vmem:[#allocation7 + $0xa0] sm:$0xff]  }
 0x197   : > { %v704_v1 = vpop.f32.mrb[12].mxu0 }
 0x198   : > { %v974_v4 = vmul.f32 %v892_v0, %v827_v60  ;;  %v779_v5 = vmul.f32 %v4237_v12, %v704_v1  ;;  %v3332_v6 = vpop.f32.mrb[13].mxu0  ;;  %v1013_v7 = vsel %vm1001_vm2, %v1008_v61, %v1012_v62  ;;  %v1016_v27 = vor.u32 %v1014_v17, %v1012_v62 }
 0x199   : > { %v707_v9 = vpop.f32.mrb[14].mxu0  ;;  %1747 = vmatprep.mubr.bf16.mxu1 %v1013_v7 }
 0x19a   : > { %v4265_v10 = vpack.c.bf16 %v974_v4, %v973_v3  ;;  %v807_v13 = vadd.f32 %v4242_v14, %v779_v5  ;;  %v780_v15 = vmul.f32 %v4237_v12, %v707_v9  ;;  %v3333_v16 = vpop.f32.mrb[15].mxu0  ;;  %1748 = vmatmul.mubr.bf16.vlgmr.msra.gmra.mrb[0].mxu1 %v990_v33  ;;  %v3597_v3 = vld [vmem:[#allocation7 + $0x218] sm:$0xff]  }
 0x19b   : > { %3079 = vmatpush3.bf16.msra.mxu1 %v3578_v2  ;;  %v3590_v2 = vld [vmem:[#allocation7 + $0xe8] sm:$0xff]  }
 0x19c   : > { %v828_v19 = vmax.f32 %v807_v13, 0.0  ;;  %v808_v20 = vadd.f32 %v4242_v14, %v780_v15  ;;  %v1091_v21 = vrot.slane %v4265_v10, 1  ;;  %v1018_v22 = vshll.u32 %v4265_v10, 16  ;;  %3080 = vmatprep.subr.bf16.mxu1 %v3582_v8  ;;  %v3592_v13 = vld [vmem:[#allocation7 + $0xa8] sm:$0xff]  }
 0x19d   : > { %v1022_v44 = vshrl.u32 %v4265_v10, 16 }
 0x19e   : > { %v829_v25 = vmax.f32 %v808_v20, 0.0  ;;  %v4274_v26 = vsel %vm1087_vm1, %v1089_v58, %v1091_v21  ;;  %v1020_v28 = vrot.slane %v1018_v22, 1  ;;  %v975_v33 = vmul.f32 %v897_v24, %v828_v19  ;;  %v3594_v19 = vld [vmem:[#allocation7 + $0xf0] sm:$0xff]   ;;  %v917_v20 = vpop.permute.xlu0 %916 }
 0x19f   : > { %v712_v30 = vpop.f32.mrb[16].mxu0  ;;  %1941 = vmatprep.mubr.bf16.mxu0 %v4274_v26  ;;  %3081 = vmatpush3.bf16.msra.mxu1 %v3583_v18 }
 0x1a0   : > { %v976_v34 = vmul.f32 %v902_v29, %v829_v25  ;;  %v781_v35 = vmul.f32 %v4237_v12, %v712_v30  ;;  %v3336_v36 = vpop.f32.mrb[17].mxu0  ;;  %v1021_v37 = vsel %vm1001_vm2, %v1016_v27, %v1020_v28  ;;  %3082 = vmatprep.subr.bf16.mxu1 %v3584_v23  ;;  %v922_v25 = vpop.permute.xlu1 %921  ;;  %v3599_v29 = vld [vmem:[#allocation7 + $0x220] sm:$0xff]  }
 0x1a1   : > { %v715_v39 = vpop.f32.mrb[18].mxu0  ;;  %1755 = vmatprep.mubr.bf16.mxu1 %v1021_v37  ;;  %1942 = vmatmul.mubr.bf16.vlgmr.msra.gmra.mrb[44].mxu0 %v1021_v37 }
 0x1a2   : > { %v4279_v40 = vpack.c.bf16 %v976_v34, %v975_v33  ;;  %v809_v41 = vadd.f32 %v4242_v14, %v781_v35  ;;  %v782_v42 = vmul.f32 %v4237_v12, %v715_v39  ;;  %v3337_v43 = vpop.f32.mrb[19].mxu0  ;;  %1756 = vmatmul.mubr.bf16.gmra.mrb[4].mxu1 %v4253_v48  ;;  %3363 = vmatpush3.bf16.msra.mxu0 %v4231_v11  ;;  %v3598_v35 = vld [vmem:[#allocation7 + $0xf8] sm:$0xff]  }
 0x1a3   : > { %3083 = vmatpush3.bf16.msra.mxu1 %v3585_v31  ;;  %3364 = vmatprep.subr.bf16.mxu0 %v3593_v32  ;;  %v1024_v11 = vor.u32 %v1022_v44, %v1020_v28  ;;  %v3596_v28 = vld [vmem:[#allocation7 + $0xb0] sm:$0xff]   ;;  %v3600_v43 = vld [vmem:[#allocation7 + $0xb8] sm:$0xff]  }
 0x1a4   : > { %v830_v46 = vmax.f32 %v809_v41, 0.0  ;;  %v810_v47 = vadd.f32 %v4242_v14, %v782_v42  ;;  %v1093_v49 = vrot.slane %v4279_v40, 1  ;;  %v1026_v50 = vshll.u32 %v4279_v40, 16  ;;  %3084 = vmatprep.subr.bf16.mxu1 %v3586_v38 }
 0x1a5   : > { %v1030_v9 = vshrl.u32 %v4279_v40, 16 }
 0x1a6   : > { %v831_v53 = vmax.f32 %v810_v47, 0.0  ;;  %v4290_v54 = vsel %vm1087_vm1, %v1091_v21, %v1093_v49  ;;  %v1028_v55 = vrot.slane %v1026_v50, 1  ;;  %3365 = vmatpush3.bf16.msra.mxu0 %v3593_v32  ;;  %v977_v60 = vmul.f32 %v907_v52, %v830_v46  ;;  %v927_v50 = vpop.permute.xlu0 %926 }
 0x1a7   : > { %v720_v58 = vpop.f32.mrb[20].mxu0  ;;  %1949 = vmatprep.mubr.bf16.mxu0 %v4290_v54  ;;  %3085 = vmatpush3.bf16.msra.mxu1 %v3587_v45 }
 0x1a8   : > { %v978_v61 = vmul.f32 %v912_v57, %v831_v53  ;;  %v783_v62 = vmul.f32 %v4237_v12, %v720_v58  ;;  %v3340_v0 = vpop.f32.mrb[21].mxu0  ;;  %v4295_v1 = vsel %vm1001_vm2, %v1024_v11, %v1028_v55  ;;  %3086 = vmatprep.subr.bf16.mxu1 %v3588_v51  ;;  %3366 = vmatprep.subr.bf16.mxu0 %v3595_v56  ;;  %v3602_v57 = vld [vmem:[#allocation7 + $0x1c0] sm:$0xff]   ;;  %v3603_v58 = vld [vmem:[#allocation7 + $0x230] sm:$0xff]  }
 0x1a9   : > { %v723_v4 = vpop.f32.mrb[22].mxu0  ;;  %1763 = vmatprep.mubr.bf16.mxu1 %v4295_v1  ;;  %1950 = vmatmul.mubr.bf16.gmra.mrb[48].mxu0 %v4295_v1  ;;  %v1032_v23 = vor.u32 %v1030_v9, %v1028_v55  ;;  %v932_v55 = vpop.permute.xlu1 %931  ;;  %v3605_v9 = vld [vmem:[#allocation7 + $0x238] sm:$0xff]  }
 0x1aa   : > { %v4299_v5 = vpack.c.bf16 %v978_v61, %v977_v60  ;;  %v811_v6 = vadd.f32 %v4242_v14, %v783_v62  ;;  %v784_v7 = vmul.f32 %v4237_v12, %v723_v4  ;;  %v3341_v8 = vpop.f32.mrb[23].mxu0  ;;  %1764 = vmatmul.mubr.bf16.gmra.mrb[8].mxu1 %v4265_v10  ;;  %3367 = vmatpush3.bf16.msra.mxu0 %v3595_v56 }
 0x1ab   : > { %3087 = vmatpush3.bf16.msra.mxu1 %v3589_v59  ;;  %3368 = vmatprep.subr.bf16.mxu0 %v3597_v3 }
 0x1ac   : > { %v832_v15 = vmax.f32 %v811_v6, 0.0  ;;  %v812_v16 = vadd.f32 %v4242_v14, %v784_v7  ;;  %v1095_v17 = vrot.slane %v4299_v5, 1  ;;  %v1034_v18 = vshll.u32 %v4299_v5, 16  ;;  %3088 = vmatprep.subr.bf16.mxu1 %v3590_v2 }
 0x1ad   : > { %v1038_v42 = vshrl.u32 %v4299_v5, 16 }
 0x1ae   : > { %v833_v21 = vmax.f32 %v812_v16, 0.0  ;;  %v4309_v22 = vsel %vm1087_vm1, %v1093_v49, %v1095_v17  ;;  %v1036_v24 = vrot.slane %v1034_v18, 1  ;;  %v979_v30 = vmul.f32 %v917_v20, %v832_v15  ;;  %3369 = vmatpush3.bf16.msra.mxu0 %v3597_v3  ;;  %v3601_v49 = vld [vmem:[#allocation7 + $0x228] sm:$0xff]   ;;  %v937_v18 = vpop.permute.xlu0 %936 }
 0x1af   : > { %v728_v27 = vpop.f32.mrb[24].mxu0  ;;  %1957 = vmatprep.mubr.bf16.mxu0 %v4309_v22  ;;  %3089 = vmatpush3.bf16.msra.mxu1 %v3592_v13 }
 0x1b0   : > { %v980_v31 = vmul.f32 %v922_v25, %v833_v21  ;;  %v785_v32 = vmul.f32 %v4237_v12, %v728_v27  ;;  %v3344_v33 = vpop.f32.mrb[25].mxu0  ;;  %v4314_v34 = vsel %vm1001_vm2, %v1032_v23, %v1036_v24  ;;  %3090 = vmatprep.subr.bf16.mxu1 %v3594_v19  ;;  %3370 = vmatprep.subr.bf16.mxu0 %v3599_v29 }
 0x1b1   : > { %v731_v36 = vpop.f32.mrb[26].mxu0  ;;  %1771 = vmatprep.mubr.bf16.mxu1 %v4314_v34  ;;  %1958 = vmatmul.mubr.bf16.gmra.mrb[52].mxu0 %v4314_v34  ;;  %v1040_v53 = vor.u32 %v1038_v42, %v1036_v24  ;;  %v942_v24 = vpop.permute.xlu1 %941 }
 0x1b2   : > { %v4318_v37 = vpack.c.bf16 %v980_v31, %v979_v30  ;;  %v813_v38 = vadd.f32 %v4242_v14, %v785_v32  ;;  %v786_v39 = vmul.f32 %v4237_v12, %v731_v36  ;;  %v3345_v41 = vpop.f32.mrb[27].mxu0  ;;  %1772 = vmatmul.mubr.bf16.gmra.mrb[12].mxu1 %v4279_v40  ;;  %3371 = vmatpush3.bf16.msra.mxu0 %v3599_v29 }
 0x1b3   : > { %3091 = vmatpush3.bf16.msra.mxu1 %v3596_v28  ;;  %3372 = vmatprep.subr.bf16.mxu0 %v3601_v49 }
 0x1b4   : > { %v834_v44 = vmax.f32 %v813_v38, 0.0  ;;  %v814_v45 = vadd.f32 %v4242_v14, %v786_v39  ;;  %v1097_v46 = vrot.slane %v4318_v37, 1  ;;  %v1042_v47 = vshll.u32 %v4318_v37, 16  ;;  %3092 = vmatprep.subr.bf16.mxu1 %v3598_v35 }
 0x1b5   : > { %v1046_v8 = vshrl.u32 %v4318_v37, 16 }
 0x1b6   : > { %v835_v51 = vmax.f32 %v814_v45, 0.0  ;;  %v4328_v52 = vsel %vm1087_vm1, %v1095_v17, %v1097_v46  ;;  %v1044_v11 = vrot.slane %v1042_v47, 1  ;;  %v981_v59 = vmul.f32 %v927_v50, %v834_v44  ;;  %3373 = vmatpush3.bf16.msra.mxu0 %v3601_v49  ;;  %v947_v45 = vpop.permute.xlu0 %946 }
 0x1b7   : > { %v736_v56 = vpop.f32.mrb[28].mxu0  ;;  %1965 = vmatprep.mubr.bf16.mxu0 %v4328_v52  ;;  %3093 = vmatpush3.bf16.msra.mxu1 %v3600_v43 }
 0x1b8   : > { %v982_v60 = vmul.f32 %v932_v55, %v835_v51  ;;  %v787_v61 = vmul.f32 %v4237_v12, %v736_v56  ;;  %v3348_v62 = vpop.f32.mrb[29].mxu0  ;;  %v4333_v0 = vsel %vm1001_vm2, %v1040_v53, %v1044_v11  ;;  %3206 = vmatprep.subr.bf16.mxu1 %v3602_v57  ;;  %3374 = vmatprep.subr.bf16.mxu0 %v3603_v58  ;;  %v952_v51 = vpop.permute.xlu1 %951 }
 0x1b9   : > { %v739_v2 = vpop.f32.mrb[30].mxu0  ;;  %1779 = vmatprep.mubr.bf16.mxu1 %v4333_v0  ;;  %1966 = vmatmul.mubr.bf16.gmra.mrb[56].mxu0 %v4333_v0  ;;  %v1048_v21 = vor.u32 %v1046_v8, %v1044_v11 }
 0x1ba   : > { %v4337_v3 = vpack.c.bf16 %v982_v60, %v981_v59  ;;  %v815_v4 = vadd.f32 %v4242_v14, %v787_v61  ;;  %v788_v6 = vmul.f32 %v4237_v12, %v739_v2  ;;  %v3349_v7 = vpop.f32.mrb[31].mxu0  ;;  %1780 = vmatmul.mubr.bf16.gmra.mrb[16].mxu1 %v4299_v5  ;;  %3375 = vmatpush3.bf16.msra.mxu0 %v3603_v58 }
 0x1bb   : > { %3376 = vmatprep.subr.bf16.mxu0 %v3605_v9 }
 0x1bc   : > { %v836_v13 = vmax.f32 %v815_v4, 0.0  ;;  %v816_v15 = vadd.f32 %v4242_v14, %v788_v6  ;;  %v1099_v16 = vrot.slane %v4337_v3, 1  ;;  %v1050_v17 = vshll.u32 %v4337_v3, 16 }
 0x1bd   : > { %v1054_v39 = vshrl.u32 %v4337_v3, 16 }
 0x1be   : > { %v837_v19 = vmax.f32 %v816_v15, 0.0  ;;  %v4347_v20 = vsel %vm1087_vm1, %v1097_v46, %v1099_v16  ;;  %v1052_v23 = vrot.slane %v1050_v17, 1  ;;  %v983_v27 = vmul.f32 %v937_v18, %v836_v13  ;;  %3377 = vmatpush3.bf16.msra.mxu0 %v3605_v9  ;;  %v957_v13 = vpop.permute.xlu0 %956 }
 0x1bf   : > { %v744_v25 = vpop.f32.mrb[32].mxu0  ;;  %1973 = vmatprep.mubr.bf16.mxu0 %v4347_v20 }
 0x1c0   : > { %v984_v28 = vmul.f32 %v942_v24, %v837_v19  ;;  %v789_v29 = vmul.f32 %v4237_v12, %v744_v25  ;;  %v3352_v30 = vpop.f32.mrb[33].mxu0  ;;  %v4352_v31 = vsel %vm1001_vm2, %v1048_v21, %v1052_v23  ;;  %v1056_v49 = vor.u32 %v1054_v39, %v1052_v23  ;;  %v962_v19 = vpop.permute.xlu1 %961 }
 0x1c1   : > { %v747_v32 = vpop.f32.mrb[34].mxu0  ;;  %1787 = vmatprep.mubr.bf16.mxu1 %v4352_v31  ;;  %1974 = vmatmul.mubr.bf16.gmra.mrb[60].mxu0 %v4352_v31 }
 0x1c2   : > { %v4356_v33 = vpack.c.bf16 %v984_v28, %v983_v27  ;;  %v817_v35 = vadd.f32 %v4242_v14, %v789_v29  ;;  %v790_v36 = vmul.f32 %v4237_v12, %v747_v32  ;;  %v3353_v38 = vpop.f32.mrb[35].mxu0  ;;  %1788 = vmatmul.mubr.bf16.gmra.mrb[20].mxu1 %v4318_v37 }
 0x1c4   : > { %v838_v41 = vmax.f32 %v817_v35, 0.0  ;;  %v818_v42 = vadd.f32 %v4242_v14, %v790_v36  ;;  %v1101_v43 = vrot.slane %v4356_v33, 1  ;;  %v1058_v44 = vshll.u32 %v4356_v33, 16 }
 0x1c5   : > { %v1062_v4 = vshrl.u32 %v4356_v33, 16 }
 0x1c6   : > { %v839_v46 = vmax.f32 %v818_v42, 0.0  ;;  %v4366_v47 = vsel %vm1087_vm1, %v1099_v16, %v1101_v43  ;;  %v1060_v50 = vrot.slane %v1058_v44, 1  ;;  %v985_v11 = vmul.f32 %v947_v45, %v838_v41  ;;  %v967_v41 = vpop.permute.xlu0 %966  ;;  %v3604_v45 = vld [vmem:[#allocation7 + $0x180] sm:$0xff]  }
 0x1c7   : > { %v752_v53 = vpop.f32.mrb[36].mxu0  ;;  %1981 = vmatprep.mubr.bf16.mxu0 %v4366_v47 }
 0x1c8   : > { %v986_v55 = vmul.f32 %v952_v51, %v839_v46  ;;  %v791_v56 = vmul.f32 %v4237_v12, %v752_v53  ;;  %v3356_v57 = vpop.f32.mrb[37].mxu0  ;;  %v4371_v58 = vsel %vm1001_vm2, %v1056_v49, %v1060_v50  ;;  %v1064_v17 = vor.u32 %v1062_v4, %v1060_v50  ;;  %v3606_v49 = vld [vmem:[#allocation7 + $0x1c8] sm:$0xff]  }
 0x1c9   : > { %v755_v59 = vpop.f32.mrb[38].mxu0  ;;  %1795 = vmatprep.mubr.bf16.mxu1 %v4371_v58  ;;  %1982 = vmatmul.mubr.bf16.gmra.mrb[64].mxu0 %v4371_v58  ;;  %v3607_v53 = vld [vmem:[#allocation7 + $0x188] sm:$0xff]  }
 0x1ca   : > { %v4375_v60 = vpack.c.bf16 %v986_v55, %v985_v11  ;;  %v819_v61 = vadd.f32 %v4242_v14, %v791_v56  ;;  %v792_v62 = vmul.f32 %v4237_v12, %v755_v59  ;;  %1796 = vmatmul.mubr.bf16.gmra.mrb[24].mxu1 %v4337_v3  ;;  %v3357_v2 = vpop.f32.mrb[39].mxu0  ;;  %v3608_v11 = vld [vmem:[#allocation7 + $0x1d0] sm:$0xff]   ;;  %v3614_v4 = vld [vmem:[#allocation7 + $0x1e8] sm:$0xff]  }
 0x1cb   : > { %v3609_v59 = vld [vmem:[#allocation7 + $0x190] sm:$0xff]   ;;  %v3613_v2 = vld [vmem:[#allocation7 + $0x1a0] sm:$0xff]  }
 0x1cc   : > { %v840_v6 = vmax.f32 %v819_v61, 0.0  ;;  %v820_v7 = vadd.f32 %v4242_v14, %v792_v62  ;;  %v1103_v8 = vrot.slane %v4375_v60, 1  ;;  %v1066_v9 = vshll.u32 %v4375_v60, 16  ;;  %v3610_v61 = vld [vmem:[#allocation7 + $0x1d8] sm:$0xff]   ;;  %v3612_v62 = vld [vmem:[#allocation7 + $0x1e0] sm:$0xff]  }
 0x1cd   : > { %v1113_v38 = vshrl.u32 %v4375_v60, 16 }
 0x1ce   : > { %v841_v15 = vmax.f32 %v820_v7, 0.0  ;;  %v4385_v16 = vsel %vm1087_vm1, %v1101_v43, %v1103_v8  ;;  %v1068_v18 = vrot.slane %v1066_v9, 1  ;;  %v987_v23 = vmul.f32 %v957_v13, %v840_v6  ;;  %v3616_v6 = vld [vmem:[#allocation7 + $0x1f0] sm:$0xff]  }
 0x1cf   : > { %v760_v21 = vpop.f32.mrb[40].mxu0  ;;  %1989 = vmatprep.mubr.bf16.mxu0 %v4385_v16  ;;  %v3617_v7 = vld [vmem:[#allocation7 + $0x1b0] sm:$0xff]  }
 0x1d0   : > { %v988_v24 = vmul.f32 %v962_v19, %v841_v15  ;;  %v793_v25 = vmul.f32 %v4237_v12, %v760_v21  ;;  %v4390_v27 = vsel %vm1001_vm2, %v1064_v17, %v1068_v18  ;;  %v3360_v28 = vpop.f32.mrb[41].mxu0  ;;  %v1115_v44 = vor.u32 %v1113_v38, %v1068_v18  ;;  %v3624_v15 = vld [vmem:[#allocation8 + $0x20] sm:$0xff]  }
 0x1d1   : > { %1803 = vmatprep.mubr.bf16.mxu1 %v4390_v27  ;;  %1990 = vmatmul.mubr.bf16.gmra.mrb[68].mxu0 %v4390_v27  ;;  %v763_v29 = vpop.f32.mrb[42].mxu0 }
 0x1d2   : > { %v4394_v30 = vpack.c.bf16 %v988_v24, %v987_v23  ;;  %v821_v32 = vadd.f32 %v4242_v14, %v793_v25  ;;  %1804 = vmatmul.mubr.bf16.gmra.mrb[28].mxu1 %v4356_v33  ;;  %v3361_v35 = vpop.f32.mrb[43].mxu0  ;;  %v3625_v24 = vld [vmem:[#allocation8 + $0x28] sm:$0xff]  }
 0x1d3   : > { %1844 = vmatprep.mubr.bf16.mxu1 %v4253_v48  ;;  %v3626_v35 = vld [vmem:[#allocation8 + $0x30] sm:$0xff]  }
 0x1d4   : > { %v842_v36 = vmax.f32 %v821_v32, 0.0  ;;  %v1123_v12 = vrot.slane %v4394_v30, 1  ;;  %v1117_v39 = vshll.u32 %v4394_v30, 16  ;;  %v1126_v50 = vshrl.u32 %v4394_v30, 16 }
 0x1d6   : > { %v989_v42 = vmul.f32 %v967_v41, %v842_v36  ;;  %v1124_v43 = vsel %vm1087_vm1, %v1103_v8, %v1123_v12  ;;  %v1119_v14 = vrot.slane %v1117_v39, 1  ;;  %v3618_v8 = vld [vmem:[#allocation7 + $0x1f8] sm:$0xff]  }
 0x1d7   : > { %1997 = vmatprep.mubr.bf16.mxu0 %v1124_v43 }
 0x1d8   : > { %v1000_v46 = vpack.c.bf16 %v989_v42, %v989_v42  ;;  %v4406_v48 = vsel %vm1001_vm2, %v1115_v44, %v1119_v14  ;;  %v1128_v55 = vor.u32 %v1126_v50, %v1119_v14 }
 0x1d9   : > { %1998 = vmatmul.mubr.bf16.gmra.mrb[72].mxu0 %v4406_v48 }
 0x1da   : > { %1845 = vmatmul.mubr.bf16.vlgmr.msra.gmra.mrb[32].mxu1 %v4261_v63  ;;  %3378 = vmatprep.mubr.bf16.mxu0 %v4290_v54  ;;  %v1130_v51 = vshll.u32 %v1000_v46, 16  ;;  %v3611_v63 = vld [vmem:[#allocation7 + $0x198] sm:$0xff]   ;;  %v1136_v9 = vrot.slane %v1000_v46, 1 }
 0x1db   : > { %3207 = vmatpush3.bf16.msra.mxu1 %v3604_v45  ;;  %1852 = vmatprep.mubr.bf16.mxu1 %v4265_v10 }
 0x1dc   : > { %3208 = vmatprep.subr.bf16.mxu1 %v3606_v49  ;;  %v1132_v56 = vrot.slane %v1130_v51, 1  ;;  %v1137_v13 = vsel %vm1087_vm1, %v1123_v12, %v1136_v9 }
 0x1de   : > { %v1133_v57 = vsel %vm1001_vm2, %v1128_v55, %v1132_v56 }
 0x1df   : > { %3209 = vmatpush3.bf16.msra.mxu1 %v3607_v53 }
 0x1e0   : > { %3210 = vmatprep.subr.bf16.mxu1 %v3608_v11 }
 0x1e1   : > { %3379 = vmatmul.mubr.bf16.vlgmr.msra.gmra.mrb[76].mxu0 %v4309_v22 }
 0x1e2   : > { %1853 = vmatmul.mubr.bf16.gmra.mrb[36].mxu1 %v4274_v26  ;;  %3382 = vmatprep.mubr.bf16.mxu0 %v4328_v52  ;;  %v3615_v26 = vld [vmem:[#allocation7 + $0x1a8] sm:$0xff]  }
 0x1e3   : > { %1860 = vmatprep.mubr.bf16.mxu1 %v4279_v40  ;;  %3211 = vmatpush3.bf16.msra.mxu1 %v3609_v59 }
 0x1e4   : > { %3212 = vmatprep.subr.bf16.mxu1 %v3610_v61 }
 0x1e7   : > { %3213 = vmatpush3.bf16.msra.mxu1 %v3611_v63 }
 0x1e8   : > { %3214 = vmatprep.subr.bf16.mxu1 %v3612_v62 }
 0x1e9   : > { %3383 = vmatmul.mubr.bf16.gmra.mrb[80].mxu0 %v4347_v20 }
 0x1ea   : > { %1861 = vmatmul.mubr.bf16.gmra.mrb[40].mxu1 %v4290_v54  ;;  %3386 = vmatprep.mubr.bf16.mxu0 %v4366_v47  ;;  %v3619_v54 = vld [vmem:[#allocation7 + $0x1b8] sm:$0xff]  }
 0x1eb   : > { %1868 = vmatprep.mubr.bf16.mxu1 %v4299_v5  ;;  %3215 = vmatpush3.bf16.msra.mxu1 %v3613_v2 }
 0x1ec   : > { %3216 = vmatprep.subr.bf16.mxu1 %v3614_v4 }
 0x1ef   : > { %3217 = vmatpush3.bf16.msra.mxu1 %v3615_v26 }
 0x1f0   : > { %3218 = vmatprep.subr.bf16.mxu1 %v3616_v6 }
 0x1f1   : > { %3387 = vmatmul.mubr.bf16.gmra.mrb[84].mxu0 %v4385_v16 }
 0x1f2   : > { %1869 = vmatmul.mubr.bf16.gmra.mrb[44].mxu1 %v4309_v22  ;;  %3390 = vmatprep.mubr.bf16.mxu0 %v1124_v43  ;;  %v3622_v22 = vld [vmem:[#allocation8 + $0x10] sm:$0xff]   ;;  %v3627_v43 = vld [vmem:[#allocation8 + $0x38] sm:$0xff]  }
 0x1f3   : > { %1876 = vmatprep.mubr.bf16.mxu1 %v4318_v37  ;;  %3219 = vmatpush3.bf16.msra.mxu1 %v3617_v7 }
 0x1f4   : > { %3220 = vmatprep.subr.bf16.mxu1 %v3618_v8 }
 0x1f7   : > { %3221 = vmatpush3.bf16.msra.mxu1 %v3619_v54 }
 0x1f9   : > { %3391 = vmatmul.mubr.bf16.gmra.mrb[88].mxu0 %v1137_v13 }
 0x1fa   : > { %1877 = vmatmul.mubr.bf16.gmra.mrb[48].mxu1 %v4328_v52 }
 0x1fb   : > { %1884 = vmatprep.mubr.bf16.mxu1 %v4337_v3 }
 0x202   : > { %1885 = vmatmul.mubr.bf16.gmra.mrb[52].mxu1 %v4347_v20 }
 0x203   : > { %1892 = vmatprep.mubr.bf16.mxu1 %v4356_v33 }
 0x20a   : > { %1893 = vmatmul.mubr.bf16.gmra.mrb[56].mxu1 %v4366_v47 }
 0x20b   : > { %1900 = vmatprep.mubr.bf16.mxu1 %v4375_v60 }
 0x212   : > { %1901 = vmatmul.mubr.bf16.gmra.mrb[60].mxu1 %v4385_v16 }
 0x213   : > { %2038 = vmatprep.mubr.bf16.mxu1 %v4295_v1 }
 0x21a   : > { %2039 = vmatmul.mubr.bf16.vlgmr.msra.gmra.mrb[64].mxu1 %v4265_v10  ;;  %v3620_v10 = vld [vmem:[#allocation8] sm:$0xff]  }
 0x21b   : > { %2046 = vmatprep.mubr.bf16.mxu1 %v4314_v34  ;;  %3394 = vmatprep.subr.bf16.mxu0 %v3620_v10 }
 0x21c   : > { %3426 = vmatprep.subr.bf16.mxu1 %v3620_v10  ;;  %3395 = vmatpush3.bf16.msra.mxu0 %v3620_v10 }
 0x21d   : > { %3434 = vmatpush3.bf16.msra.mxu1 %v3620_v10 }
 0x222   : > { %2047 = vmatmul.mubr.bf16.gmra.mrb[68].mxu1 %v4279_v40  ;;  %v3621_v40 = vld [vmem:[#allocation8 + $0x8] sm:$0xff]  }
 0x223   : > { %2054 = vmatprep.mubr.bf16.mxu1 %v4333_v0  ;;  %3396 = vmatprep.subr.bf16.mxu0 %v3621_v40 }
 0x224   : > { %3427 = vmatprep.subr.bf16.mxu1 %v3621_v40  ;;  %3397 = vmatpush3.bf16.msra.mxu0 %v3621_v40 }
 0x225   : > { %3435 = vmatpush3.bf16.msra.mxu1 %v3621_v40  ;;  %3398 = vmatprep.subr.bf16.mxu0 %v3622_v22 }
 0x226   : > { %3428 = vmatprep.subr.bf16.mxu1 %v3622_v22 }
 0x228   : > { %3399 = vmatpush3.bf16.msra.mxu0 %v3622_v22 }
 0x229   : > { %3436 = vmatpush3.bf16.msra.mxu1 %v3622_v22 }
 0x22a   : > { %2055 = vmatmul.mubr.bf16.gmra.mrb[72].mxu1 %v4299_v5 }
 0x22b   : > { %2062 = vmatprep.mubr.bf16.mxu1 %v4352_v31 }
 0x232   : > { %2063 = vmatmul.mubr.bf16.gmra.mrb[76].mxu1 %v4318_v37 }
 0x233   : > { %2070 = vmatprep.mubr.bf16.mxu1 %v4371_v58 }
 0x23a   : > { %2071 = vmatmul.mubr.bf16.gmra.mrb[80].mxu1 %v4337_v3  ;;  %v3623_v3 = vld [vmem:[#allocation8 + $0x18] sm:$0xff]  }
 0x23b   : > { %2078 = vmatprep.mubr.bf16.mxu1 %v4390_v27  ;;  %3400 = vmatprep.subr.bf16.mxu0 %v3623_v3 }
 0x23c   : > { %3429 = vmatprep.subr.bf16.mxu1 %v3623_v3  ;;  %3401 = vmatpush3.bf16.msra.mxu0 %v3623_v3 }
 0x23d   : > { %3437 = vmatpush3.bf16.msra.mxu1 %v3623_v3  ;;  %3402 = vmatprep.subr.bf16.mxu0 %v3624_v15 }
 0x23e   : > { %3430 = vmatprep.subr.bf16.mxu1 %v3624_v15 }
 0x240   : > { %3403 = vmatpush3.bf16.msra.mxu0 %v3624_v15 }
 0x241   : > { %3438 = vmatpush3.bf16.msra.mxu1 %v3624_v15  ;;  %3404 = vmatprep.subr.bf16.mxu0 %v3625_v24 }
 0x242   : > { %2079 = vmatmul.mubr.bf16.gmra.mrb[84].mxu1 %v4356_v33  ;;  %3431 = vmatprep.subr.bf16.mxu1 %v3625_v24 }
 0x243   : > { %2086 = vmatprep.mubr.bf16.mxu1 %v4406_v48 }
 0x244   : > { %3405 = vmatpush3.bf16.msra.mxu0 %v3625_v24 }
 0x245   : > { %3439 = vmatpush3.bf16.msra.mxu1 %v3625_v24  ;;  %3406 = vmatprep.subr.bf16.mxu0 %v3626_v35 }
 0x246   : > { %3432 = vmatprep.subr.bf16.mxu1 %v3626_v35 }
 0x248   : > { %3407 = vmatpush3.bf16.msra.mxu0 %v3626_v35 }
 0x249   : > { %3440 = vmatpush3.bf16.msra.mxu1 %v3626_v35  ;;  %3408 = vmatprep.subr.bf16.mxu0 %v3627_v43 }
 0x24a   : > { %2087 = vmatmul.mubr.bf16.gmra.mrb[88].mxu1 %v4375_v60  ;;  %3433 = vmatprep.subr.bf16.mxu1 %v3627_v43 }
 0x24b   : > { %2094 = vmatprep.mubr.bf16.mxu1 %v1133_v57 }
 0x24c   : > { %3409 = vmatpush3.bf16.msra.mxu0 %v3627_v43 }
 0x24d   : > { %3441 = vmatpush3.bf16.msra.mxu1 %v3627_v43 }
 0x252   : > { %2095 = vmatmul.mubr.bf16.gmra.mrb[92].mxu1 %v4394_v30 }
 0x26d   : > { %v3030_v1 = vpop.f32.mrb[0].mxu1 }
 0x26e   : > { %v3031_v5 = vpop.f32.mrb[1].mxu1 }
 0x26f   : > { %v4450_v34 = vadd.f32 %v3031_v5, %v3030_v1  ;;  %v3033_v37 = vpop.f32.mrb[2].mxu1 }
 0x270   : > { %v3034_v52 = vpop.f32.mrb[3].mxu1 }
 0x271   : > { %v4452_v0 = vadd.f32 %v3034_v52, %v3033_v37 }
 0x274   : > { %v3158_v20 = vpop.f32.mrb[44].mxu0 }
 0x275   : > { %v3036_v31 = vpop.f32.mrb[4].mxu1  ;;  %v3159_v33 = vpop.f32.mrb[45].mxu0 }
 0x276   : > { %v4454_v47 = vadd.f32 %v3159_v33, %v3158_v20  ;;  %v3037_v58 = vpop.f32.mrb[5].mxu1  ;;  %v3161_v60 = vpop.f32.mrb[46].mxu0 }
 0x277   : > { %v4456_v16 = vadd.f32 %v3037_v58, %v3036_v31  ;;  %v3039_v17 = vpop.f32.mrb[6].mxu1  ;;  %v3162_v18 = vpop.f32.mrb[47].mxu0 }
 0x278   : > { %v4458_v19 = vadd.f32 %v3162_v18, %v3161_v60  ;;  %v3040_v21 = vpop.f32.mrb[7].mxu1 }
 0x279   : > { %v4460_v23 = vadd.f32 %v3040_v21, %v3039_v17 }
 0x27c   : > { %v3164_v25 = vpop.f32.mrb[48].mxu0 }
 0x27d   : > { %v3042_v27 = vpop.f32.mrb[8].mxu1  ;;  %v3165_v28 = vpop.f32.mrb[49].mxu0 }
 0x27e   : > { %v4462_v29 = vadd.f32 %v3165_v28, %v3164_v25  ;;  %v3043_v30 = vpop.f32.mrb[9].mxu1  ;;  %v3167_v32 = vpop.f32.mrb[50].mxu0 }
 0x27f   : > { %v4464_v36 = vadd.f32 %v3043_v30, %v3042_v27  ;;  %v3045_v12 = vpop.f32.mrb[10].mxu1  ;;  %v3168_v38 = vpop.f32.mrb[51].mxu0 }
 0x280   : > { %v4466_v39 = vadd.f32 %v3168_v38, %v3167_v32  ;;  %v3046_v41 = vpop.f32.mrb[11].mxu1 }
 0x281   : > { %v4468_v42 = vadd.f32 %v3046_v41, %v3045_v12 }
 0x284   : > { %v3170_v44 = vpop.f32.mrb[52].mxu0 }
 0x285   : > { %v3048_v14 = vpop.f32.mrb[12].mxu1  ;;  %v3171_v45 = vpop.f32.mrb[53].mxu0 }
 0x286   : > { %v4470_v46 = vadd.f32 %v3171_v45, %v3170_v44  ;;  %v3049_v48 = vpop.f32.mrb[13].mxu1  ;;  %v3173_v49 = vpop.f32.mrb[54].mxu0 }
 0x287   : > { %v4472_v50 = vadd.f32 %v3049_v48, %v3048_v14  ;;  %v3051_v51 = vpop.f32.mrb[14].mxu1  ;;  %v3174_v53 = vpop.f32.mrb[55].mxu0 }
 0x288   : > { %v4474_v11 = vadd.f32 %v3174_v53, %v3173_v49  ;;  %v3052_v55 = vpop.f32.mrb[15].mxu1 }
 0x289   : > { %v4476_v56 = vadd.f32 %v3052_v55, %v3051_v51 }
 0x28c   : > { %v3176_v57 = vpop.f32.mrb[56].mxu0 }
 0x28d   : > { %v3054_v59 = vpop.f32.mrb[16].mxu1  ;;  %v3177_v61 = vpop.f32.mrb[57].mxu0 }
 0x28e   : > { %v4478_v63 = vadd.f32 %v3177_v61, %v3176_v57  ;;  %v3055_v62 = vpop.f32.mrb[17].mxu1  ;;  %v3179_v2 = vpop.f32.mrb[58].mxu0 }
 0x28f   : > { %v4480_v4 = vadd.f32 %v3055_v62, %v3054_v59  ;;  %v3057_v26 = vpop.f32.mrb[18].mxu1  ;;  %v3180_v6 = vpop.f32.mrb[59].mxu0 }
 0x290   : > { %v4482_v7 = vadd.f32 %v3180_v6, %v3179_v2  ;;  %v3058_v8 = vpop.f32.mrb[19].mxu1 }
 0x291   : > { %v4484_v54 = vadd.f32 %v3058_v8, %v3057_v26 }
 0x294   : > { %v3182_v9 = vpop.f32.mrb[60].mxu0 }
 0x295   : > { %v3060_v13 = vpop.f32.mrb[20].mxu1  ;;  %v3183_v10 = vpop.f32.mrb[61].mxu0 }
 0x296   : > { %v4486_v40 = vadd.f32 %v3183_v10, %v3182_v9  ;;  %v3061_v1 = vpop.f32.mrb[21].mxu1  ;;  %v3185_v5 = vpop.f32.mrb[62].mxu0 }
 0x297   : > { %v4488_v22 = vadd.f32 %v3061_v1, %v3060_v13  ;;  %v3063_v37 = vpop.f32.mrb[22].mxu1  ;;  %v3186_v52 = vpop.f32.mrb[63].mxu0 }
 0x298   : > { %v4490_v3 = vadd.f32 %v3186_v52, %v3185_v5  ;;  %v3064_v20 = vpop.f32.mrb[23].mxu1 }
 0x299   : > { %v4492_v31 = vadd.f32 %v3064_v20, %v3063_v37 }
 0x29c   : > { %v3188_v33 = vpop.f32.mrb[64].mxu0 }
 0x29d   : > { %v3066_v58 = vpop.f32.mrb[24].mxu1  ;;  %v3189_v60 = vpop.f32.mrb[65].mxu0 }
 0x29e   : > { %v4494_v15 = vadd.f32 %v3189_v60, %v3188_v33  ;;  %v3067_v17 = vpop.f32.mrb[25].mxu1  ;;  %v3191_v18 = vpop.f32.mrb[66].mxu0 }
 0x29f   : > { %v4496_v21 = vadd.f32 %v3067_v17, %v3066_v58  ;;  %v3069_v24 = vpop.f32.mrb[26].mxu1  ;;  %v3192_v25 = vpop.f32.mrb[67].mxu0 }
 0x2a0   : > { %v4498_v27 = vadd.f32 %v3192_v25, %v3191_v18  ;;  %v3070_v28 = vpop.f32.mrb[27].mxu1 }
 0x2a1   : > { %v4500_v30 = vadd.f32 %v3070_v28, %v3069_v24 }
 0x2a4   : > { %v3194_v32 = vpop.f32.mrb[68].mxu0 }
 0x2a5   : > { %v3072_v35 = vpop.f32.mrb[28].mxu1  ;;  %v3195_v12 = vpop.f32.mrb[69].mxu0 }
 0x2a6   : > { %v4502_v38 = vadd.f32 %v3195_v12, %v3194_v32  ;;  %v3073_v41 = vpop.f32.mrb[29].mxu1  ;;  %v3197_v43 = vpop.f32.mrb[70].mxu0 }
 0x2a7   : > { %v4504_v44 = vadd.f32 %v3073_v41, %v3072_v35  ;;  %v3075_v14 = vpop.f32.mrb[30].mxu1  ;;  %v3198_v45 = vpop.f32.mrb[71].mxu0 }
 0x2a8   : > { %v4506_v48 = vadd.f32 %v3198_v45, %v3197_v43  ;;  %v3076_v49 = vpop.f32.mrb[31].mxu1 }
 0x2a9   : > { %v4508_v51 = vadd.f32 %v3076_v49, %v3075_v14 }
 0x2ac   : > { %v3200_v53 = vpop.f32.mrb[72].mxu0 }
 0x2ad   : > { %v3094_v55 = vpop.f32.mrb[32].mxu1  ;;  %v3201_v57 = vpop.f32.mrb[73].mxu0 }
 0x2ae   : > { %v4510_v59 = vadd.f32 %v3201_v57, %v3200_v53  ;;  %v3095_v61 = vpop.f32.mrb[33].mxu1  ;;  %v3203_v62 = vpop.f32.mrb[74].mxu0 }
 0x2af   : > { %v3096_v2 = vadd.f32 %v3095_v61, %v3094_v55  ;;  %v3097_v26 = vpop.f32.mrb[34].mxu1  ;;  %v3204_v6 = vpop.f32.mrb[75].mxu0 }
 0x2b0   : > { %v4512_v8 = vadd.f32 %v3204_v6, %v3203_v62  ;;  %v3098_v9 = vpop.f32.mrb[35].mxu1 }
 0x2b1   : > { %v1847_v13 = vadd.f32 %v3096_v2, %v4450_v34  ;;  %v3099_v10 = vadd.f32 %v3098_v9, %v3097_v26 }
 0x2b3   : > { %v1850_v1 = vadd.f32 %v3099_v10, %v4452_v0  ;;  %v4517_v5 = vadd.f32 %v4454_v47, %v1847_v13 }
 0x2b4   : > { %v4519_v37 = vpop.f32.mrb[76].mxu0 }
 0x2b5   : > { %v3100_v52 = vpop.f32.mrb[36].mxu1  ;;  %v4521_v20 = vpop.f32.mrb[77].mxu0  ;;  %v4524_v33 = vadd.f32 %v4458_v19, %v1850_v1 }
 0x2b6   : > { %v3101_v58 = vpop.f32.mrb[37].mxu1  ;;  %v4526_v60 = vpop.f32.mrb[78].mxu0 }
 0x2b7   : > { %v3102_v17 = vadd.f32 %v3101_v58, %v3100_v52  ;;  %v3103_v18 = vpop.f32.mrb[38].mxu1  ;;  %v4528_v34 = vpop.f32.mrb[79].mxu0 }
 0x2b8   : > { %v3104_v24 = vpop.f32.mrb[39].mxu1 }
 0x2b9   : > { %v1855_v0 = vadd.f32 %v3102_v17, %v4456_v16  ;;  %v3105_v47 = vadd.f32 %v3104_v24, %v3103_v18 }
 0x2bb   : > { %v1858_v25 = vadd.f32 %v3105_v47, %v4460_v23  ;;  %v4533_v28 = vadd.f32 %v4462_v29, %v1855_v0 }
 0x2bc   : > { %v4535_v32 = vpop.f32.mrb[80].mxu0 }
 0x2bd   : > { %v3106_v19 = vpop.f32.mrb[40].mxu1  ;;  %v4537_v35 = vpop.f32.mrb[81].mxu0  ;;  %v4540_v12 = vadd.f32 %v4466_v39, %v1858_v25 }
 0x2be   : > { %v3107_v41 = vpop.f32.mrb[41].mxu1  ;;  %v4542_v43 = vpop.f32.mrb[82].mxu0 }
 0x2bf   : > { %v3108_v14 = vadd.f32 %v3107_v41, %v3106_v19  ;;  %v3109_v45 = vpop.f32.mrb[42].mxu1  ;;  %v4544_v16 = vpop.f32.mrb[83].mxu0 }
 0x2c0   : > { %v3110_v49 = vpop.f32.mrb[43].mxu1 }
 0x2c1   : > { %v1863_v23 = vadd.f32 %v3108_v14, %v4464_v36  ;;  %v3111_v29 = vadd.f32 %v3110_v49, %v3109_v45 }
 0x2c3   : > { %v1866_v53 = vadd.f32 %v3111_v29, %v4468_v42  ;;  %v4549_v55 = vadd.f32 %v4470_v46, %v1863_v23 }
 0x2c4   : > { %v4551_v57 = vpop.f32.mrb[84].mxu0 }
 0x2c5   : > { %v3112_v39 = vpop.f32.mrb[44].mxu1  ;;  %v4553_v61 = vpop.f32.mrb[85].mxu0  ;;  %v4556_v62 = vadd.f32 %v4474_v11, %v1866_v53 }
 0x2c6   : > { %v3113_v2 = vpop.f32.mrb[45].mxu1  ;;  %v4558_v26 = vpop.f32.mrb[86].mxu0 }
 0x2c7   : > { %v3114_v6 = vadd.f32 %v3113_v2, %v3112_v39  ;;  %v3115_v9 = vpop.f32.mrb[46].mxu1  ;;  %v4560_v36 = vpop.f32.mrb[87].mxu0 }
 0x2c8   : > { %v3116_v13 = vpop.f32.mrb[47].mxu1 }
 0x2c9   : > { %v1871_v42 = vadd.f32 %v3114_v6, %v4472_v50  ;;  %v3117_v46 = vadd.f32 %v3116_v13, %v3115_v9 }
 0x2cb   : > { %v1874_v10 = vadd.f32 %v3117_v46, %v4476_v56  ;;  %v4565_v1 = vadd.f32 %v4478_v63, %v1871_v42 }
 0x2cc   : > { %v4567_v52 = vpop.f32.mrb[88].mxu0 }
 0x2cd   : > { %v3118_v11 = vpop.f32.mrb[48].mxu1  ;;  %v4569_v58 = vpop.f32.mrb[89].mxu0  ;;  %v4572_v17 = vadd.f32 %v4482_v7, %v1874_v10 }
 0x2ce   : > { %v3119_v18 = vpop.f32.mrb[49].mxu1  ;;  %v4574_v24 = vpop.f32.mrb[90].mxu0 }
 0x2cf   : > { %v3120_v0 = vadd.f32 %v3119_v18, %v3118_v11  ;;  %v3121_v47 = vpop.f32.mrb[50].mxu1  ;;  %v4576_v50 = vpop.f32.mrb[91].mxu0 }
 0x2d0   : > { %v3122_v25 = vpop.f32.mrb[51].mxu1 }
 0x2d1   : > { %v1879_v56 = vadd.f32 %v3120_v0, %v4480_v4  ;;  %v3123_v63 = vadd.f32 %v3122_v25, %v3121_v47 }
 0x2d3   : > { %v1882_v19 = vadd.f32 %v3123_v63, %v4484_v54  ;;  %v4581_v41 = vadd.f32 %v4486_v40, %v1879_v56 }
 0x2d5   : > { %v3124_v14 = vpop.f32.mrb[52].mxu1  ;;  %v4584_v7 = vadd.f32 %v4490_v3, %v1882_v19 }
 0x2d6   : > { %v3125_v45 = vpop.f32.mrb[53].mxu1 }
 0x2d7   : > { %v3126_v49 = vadd.f32 %v3125_v45, %v3124_v14  ;;  %v3127_v23 = vpop.f32.mrb[54].mxu1 }
 0x2d8   : > { %v3128_v29 = vpop.f32.mrb[55].mxu1 }
 0x2d9   : > { %v1887_v53 = vadd.f32 %v3126_v49, %v4488_v22  ;;  %v3129_v39 = vadd.f32 %v3128_v29, %v3127_v23 }
 0x2db   : > { %v1890_v2 = vadd.f32 %v3129_v39, %v4492_v31  ;;  %v4589_v4 = vadd.f32 %v4494_v15, %v1887_v53 }
 0x2dd   : > { %v3130_v54 = vpop.f32.mrb[56].mxu1  ;;  %v4592_v40 = vadd.f32 %v4498_v27, %v1890_v2 }
 0x2de   : > { %v3131_v6 = vpop.f32.mrb[57].mxu1 }
 0x2df   : > { %v3132_v9 = vadd.f32 %v3131_v6, %v3130_v54  ;;  %v3133_v3 = vpop.f32.mrb[58].mxu1 }
 0x2e0   : > { %v3134_v13 = vpop.f32.mrb[59].mxu1 }
 0x2e1   : > { %v1895_v42 = vadd.f32 %v3132_v9, %v4496_v21  ;;  %v3135_v46 = vadd.f32 %v3134_v13, %v3133_v3 }
 0x2e3   : > { %v1898_v10 = vadd.f32 %v3135_v46, %v4500_v30  ;;  %v4597_v22 = vadd.f32 %v4502_v38, %v1895_v42 }
 0x2e5   : > { %v3136_v31 = vpop.f32.mrb[60].mxu1  ;;  %v4600_v15 = vadd.f32 %v4506_v48, %v1898_v10 }
 0x2e6   : > { %v3137_v11 = vpop.f32.mrb[61].mxu1 }
 0x2e7   : > { %v3138_v18 = vadd.f32 %v3137_v11, %v3136_v31  ;;  %v3139_v27 = vpop.f32.mrb[62].mxu1 }
 0x2e8   : > { %v3140_v0 = vpop.f32.mrb[63].mxu1 }
 0x2e9   : > { %v1903_v47 = vadd.f32 %v3138_v18, %v4504_v44  ;;  %v3141_v25 = vadd.f32 %v3140_v0, %v3139_v27  ;;  %v4614_v44 = vld [vmem:[%s4804_s7] ss:$0 sm:$0xff] }
 0x2eb   : > { %v1906_v56 = vadd.f32 %v3141_v25, %v4508_v51  ;;  %v4605_v21 = vadd.f32 %v4510_v59, %v1903_v47 }
 0x2ed   : > { %v3222_v30 = vpop.f32.mrb[64].mxu1  ;;  %v4608_v38 = vadd.f32 %v4512_v8, %v1906_v56  ;;  %v4621_v8 = vld [vmem:[%s4836_s17] ss:$0 sm:$0xff] }
 0x2ee   : > { %v3223_v63 = vpop.f32.mrb[65].mxu1 }
 0x2ef   : > { %v3224_v19 = vadd.f32 %v3223_v63, %v3222_v30  ;;  %v3225_v48 = vpop.f32.mrb[66].mxu1 }
 0x2f0   : > { %v3226_v14 = vpop.f32.mrb[67].mxu1 }
 0x2f1   : > { %v2041_v45 = vadd.f32 %v3224_v19, %v4517_v5  ;;  %v3227_v49 = vadd.f32 %v3226_v14, %v3225_v48 }
 0x2f3   : > { %v2138_v51 = vadd.f32 %v4521_v20, %v2041_v45  ;;  %v2044_v59 = vadd.f32 %v3227_v49, %v4524_v33 }
 0x2f5   : > { %v2207_v23 = vmul.f32 %v4614_v44, %v2138_v51  ;;  %v2141_v29 = vadd.f32 %v4528_v34, %v2044_v59  ;;  %v3228_v5 = vpop.f32.mrb[68].mxu1 }
 0x2f6   : > { %v3229_v53 = vpop.f32.mrb[69].mxu1 }
 0x2f7   : > { %v2208_v39 = vmul.f32 %v4614_v44, %v2141_v29  ;;  %v3230_v2 = vadd.f32 %v3229_v53, %v3228_v5  ;;  %v3231_v54 = vpop.f32.mrb[70].mxu1  ;;  %v2230_v6 = vadd.f32 %v4621_v8, %v2207_v23 }
 0x2f8   : > { %v3232_v20 = vpop.f32.mrb[71].mxu1 }
 0x2f9   : > { %v2049_v33 = vadd.f32 %v3230_v2, %v4533_v28  ;;  %v3233_v9 = vadd.f32 %v3232_v20, %v3231_v54  ;;  %v2231_v3 = vadd.f32 %v4621_v8, %v2208_v39  ;;  %v2246_v46 = vmax.f32 %v2230_v6, 0.0 }
 0x2fb   : > { %v2146_v13 = vadd.f32 %v4519_v37, %v2049_v33  ;;  %v2052_v42 = vadd.f32 %v3233_v9, %v4540_v12  ;;  %v2247_v34 = vmax.f32 %v2231_v3, 0.0 }
 0x2fd   : > { %v2209_v10 = vmul.f32 %v4614_v44, %v2146_v13  ;;  %v2149_v31 = vadd.f32 %v4526_v60, %v2052_v42  ;;  %v3234_v11 = vpop.f32.mrb[72].mxu1  ;;  %v2262_v18 = vpack.c.bf16 %v2247_v34, %v2246_v46 }
 0x2fe   : > { %v3235_v27 = vpop.f32.mrb[73].mxu1 }
 0x2ff   : > { %v2232_v0 = vadd.f32 %v4621_v8, %v2209_v10  ;;  %v2210_v28 = vmul.f32 %v4614_v44, %v2149_v31  ;;  %v3236_v47 = vadd.f32 %v3235_v27, %v3234_v11  ;;  %v3237_v25 = vpop.f32.mrb[74].mxu1  ;;  %3410 = vmatprep.mubr.bf16.mxu0 %v2262_v18 }
 0x300   : > { %v3238_v56 = vpop.f32.mrb[75].mxu1 }
 0x301   : > { %v2233_v37 = vadd.f32 %v4621_v8, %v2210_v28  ;;  %v2057_v12 = vadd.f32 %v3236_v47, %v4549_v55  ;;  %v3239_v30 = vadd.f32 %v3238_v56, %v3237_v25  ;;  %v2248_v63 = vmax.f32 %v2232_v0, 0.0 }
 0x303   : > { %v2249_v19 = vmax.f32 %v2233_v37, 0.0  ;;  %v2154_v60 = vadd.f32 %v4537_v35, %v2057_v12  ;;  %v2060_v48 = vadd.f32 %v3239_v30, %v4556_v62 }
 0x305   : > { %v2263_v14 = vpack.c.bf16 %v2249_v19, %v2248_v63  ;;  %v2211_v45 = vmul.f32 %v4614_v44, %v2154_v60  ;;  %v2157_v49 = vadd.f32 %v4544_v16, %v2060_v48  ;;  %v3240_v51 = vpop.f32.mrb[76].mxu1 }
 0x306   : > { %v3241_v59 = vpop.f32.mrb[77].mxu1 }
 0x307   : > { %v2212_v23 = vmul.f32 %v4614_v44, %v2157_v49  ;;  %v3242_v29 = vadd.f32 %v3241_v59, %v3240_v51  ;;  %v3243_v5 = vpop.f32.mrb[78].mxu1  ;;  %3411 = vmatmul.mubr.bf16.vlgmr.msra.gmra.mrb[92].mxu0 %v2263_v14  ;;  %v2234_v55 = vadd.f32 %v4621_v8, %v2211_v45 }
 0x308   : > { %v3244_v53 = vpop.f32.mrb[79].mxu1 }
 0x309   : > { %v2065_v39 = vadd.f32 %v3242_v29, %v4565_v1  ;;  %v3245_v35 = vadd.f32 %v3244_v53, %v3243_v5  ;;  %v2235_v62 = vadd.f32 %v4621_v8, %v2212_v23  ;;  %v2250_v16 = vmax.f32 %v2234_v55, 0.0 }
 0x30b   : > { %v2162_v2 = vadd.f32 %v4535_v32, %v2065_v39  ;;  %v2068_v54 = vadd.f32 %v3245_v35, %v4572_v17  ;;  %v2251_v6 = vmax.f32 %v2235_v62, 0.0 }
 0x30d   : > { %v2213_v20 = vmul.f32 %v4614_v44, %v2162_v2  ;;  %v2165_v33 = vadd.f32 %v4542_v43, %v2068_v54  ;;  %v3246_v9 = vpop.f32.mrb[80].mxu1  ;;  %v2264_v3 = vpack.c.bf16 %v2251_v6, %v2250_v16 }
 0x30e   : > { %v3247_v13 = vpop.f32.mrb[81].mxu1 }
 0x30f   : > { %v2214_v42 = vmul.f32 %v4614_v44, %v2165_v33  ;;  %v3248_v46 = vadd.f32 %v3247_v13, %v3246_v9  ;;  %v3249_v1 = vpop.f32.mrb[82].mxu1  ;;  %3414 = vmatprep.mubr.bf16.mxu0 %v2264_v3  ;;  %v2236_v34 = vadd.f32 %v4621_v8, %v2213_v20 }
 0x310   : > { %v3250_v10 = vpop.f32.mrb[83].mxu1 }
 0x311   : > { %v2073_v32 = vadd.f32 %v3248_v46, %v4581_v41  ;;  %v3251_v17 = vadd.f32 %v3250_v10, %v3249_v1  ;;  %v2237_v31 = vadd.f32 %v4621_v8, %v2214_v42  ;;  %v2252_v18 = vmax.f32 %v2236_v34, 0.0 }
 0x313   : > { %v2170_v11 = vadd.f32 %v4553_v61, %v2073_v32  ;;  %v2076_v43 = vadd.f32 %v3251_v17, %v4584_v7  ;;  %v2253_v27 = vmax.f32 %v2237_v31, 0.0 }
 0x315   : > { %v2215_v0 = vmul.f32 %v4614_v44, %v2170_v11  ;;  %v2173_v28 = vadd.f32 %v4560_v36, %v2076_v43  ;;  %v3252_v47 = vpop.f32.mrb[84].mxu1  ;;  %v2265_v25 = vpack.c.bf16 %v2253_v27, %v2252_v18 }
 0x316   : > { %v3253_v56 = vpop.f32.mrb[85].mxu1 }
 0x317   : > { %v2216_v37 = vmul.f32 %v4614_v44, %v2173_v28  ;;  %v3254_v12 = vadd.f32 %v3253_v56, %v3252_v47  ;;  %v3255_v41 = vpop.f32.mrb[86].mxu1  ;;  %3415 = vmatmul.mubr.bf16.gmra.mrb[96].mxu0 %v2265_v25  ;;  %v2238_v30 = vadd.f32 %v4621_v8, %v2215_v0  ;;  %v4688_v0 = vld [vmem:[%s4837_s29] ss:$0 sm:$0xff]  ;;  %s3748_s29 = scalar_lea.vmem %s3747_s27, 2048 }
 0x318   : > { %v3256_v63 = vpop.f32.mrb[87].mxu1  ;;  %v2910_v28 = vld [vmem:[%s4106_s8] sm:$0xff]  }
 0x319   : > { %v2081_v61 = vadd.f32 %v3254_v12, %v4589_v4  ;;  %v3257_v7 = vadd.f32 %v3256_v63, %v3255_v41  ;;  %v2239_v19 = vadd.f32 %v4621_v8, %v2216_v37  ;;  %v2254_v48 = vmax.f32 %v2238_v30, 0.0  ;;  %v4694_v47 = vld [vmem:[%s4838_s20] ss:$0 sm:$0xff] }
 0x31a   : > { %v2911_v56 = vunpack.c.l.bf16 %v2910_v28 }
 0x31b   : > { %v2178_v60 = vadd.f32 %v4551_v57, %v2081_v61  ;;  %v2084_v36 = vadd.f32 %v3257_v7, %v4592_v40  ;;  %v2255_v14 = vmax.f32 %v2239_v19, 0.0  ;;  %v2912_v19 = vunpack.c.h.bf16 %v2910_v28 }
 0x31d   : > { %v2217_v45 = vmul.f32 %v4614_v44, %v2178_v60  ;;  %v2181_v49 = vadd.f32 %v4558_v26, %v2084_v36  ;;  %v3258_v51 = vpop.f32.mrb[88].mxu1  ;;  %v2266_v59 = vpack.c.bf16 %v2255_v14, %v2254_v48 }
 0x31e   : > { %v3259_v23 = vpop.f32.mrb[89].mxu1 }
 0x31f   : > { %v2218_v29 = vmul.f32 %v4614_v44, %v2181_v49  ;;  %v3260_v5 = vadd.f32 %v3259_v23, %v3258_v51  ;;  %v3261_v4 = vpop.f32.mrb[90].mxu1  ;;  %3418 = vmatprep.mubr.bf16.mxu0 %v2266_v59  ;;  %v2240_v55 = vadd.f32 %v4621_v8, %v2217_v45 }
 0x320   : > { %v3262_v53 = vpop.f32.mrb[91].mxu1 }
 0x321   : > { %v2089_v57 = vadd.f32 %v3260_v5, %v4597_v22  ;;  %v3263_v40 = vadd.f32 %v3262_v53, %v3261_v4  ;;  %v2241_v39 = vadd.f32 %v4621_v8, %v2218_v29  ;;  %v2256_v62 = vmax.f32 %v2240_v55, 0.0  ;;  %v2983_v53 = vld [vmem:[%s4106_s8 + $0x18] sm:$0xff]  }
 0x323   : > { %v2186_v35 = vadd.f32 %v4569_v58, %v2089_v57  ;;  %v2092_v26 = vadd.f32 %v3263_v40, %v4600_v15  ;;  %v2257_v2 = vmax.f32 %v2241_v39, 0.0  ;;  %v2982_v57 = vld [vmem:[%s4106_s8 + $0x10] sm:$0xff]   ;;  %v2923_v39 = vunpack.c.l.bf16 %v2983_v53 }
 0x325   : > { %v2219_v54 = vmul.f32 %v4614_v44, %v2186_v35  ;;  %v2189_v16 = vadd.f32 %v4576_v50, %v2092_v26  ;;  %v3264_v6 = vpop.f32.mrb[92].mxu1  ;;  %v2267_v20 = vpack.c.bf16 %v2257_v2, %v2256_v62  ;;  %v2919_v62 = vunpack.c.l.bf16 %v2982_v57 }
 0x326   : > { %v3265_v33 = vpop.f32.mrb[93].mxu1 }
 0x327   : > { %v2220_v9 = vmul.f32 %v4614_v44, %v2189_v16  ;;  %v3266_v3 = vadd.f32 %v3265_v33, %v3264_v6  ;;  %v3267_v22 = vpop.f32.mrb[94].mxu1  ;;  %3419 = vmatmul.mubr.bf16.gmra.mrb[100].mxu0 %v2267_v20  ;;  %v2242_v13 = vadd.f32 %v4621_v8, %v2219_v54  ;;  %v2924_v6 = vunpack.c.h.bf16 %v2983_v53 }
 0x328   : > { %v3268_v42 = vpop.f32.mrb[95].mxu1 }
 0x329   : > { %v2097_v58 = vadd.f32 %v3266_v3, %v4605_v21  ;;  %v3269_v15 = vadd.f32 %v3268_v42, %v3267_v22  ;;  %v2243_v46 = vadd.f32 %v4621_v8, %v2220_v9  ;;  %v2258_v34 = vmax.f32 %v2242_v13, 0.0 }
 0x32a   : > { %v2920_v3 = vunpack.c.h.bf16 %v2982_v57 }
 0x32b   : > { %v2194_v1 = vadd.f32 %v4567_v52, %v2097_v58  ;;  %v2100_v50 = vadd.f32 %v3269_v15, %v4608_v38  ;;  %v2259_v10 = vmax.f32 %v2243_v46, 0.0  ;;  %v2981_v38 = vld [vmem:[%s4106_s8 + $0x8] sm:$0xff]  }
 0x32c   : > { %v2916_v30 = vunpack.c.h.bf16 %v2981_v38 }
 0x32d   : > { %v2221_v32 = vmul.f32 %v4614_v44, %v2194_v1  ;;  %v2197_v17 = vadd.f32 %v4574_v24, %v2100_v50  ;;  %v2268_v31 = vpack.c.bf16 %v2259_v10, %v2258_v34 }
 0x32f   : > { %v2244_v11 = vadd.f32 %v4621_v8, %v2221_v32  ;;  %v2222_v21 = vmul.f32 %v4614_v44, %v2197_v17  ;;  %3422 = vmatprep.mubr.bf16.mxu1 %v2268_v31  ;;  %v2915_v44 = vunpack.c.l.bf16 %v2981_v38 }
 0x331   : > { %v2245_v43 = vadd.f32 %v4621_v8, %v2222_v21  ;;  %v2260_v18 = vmax.f32 %v2244_v11, 0.0  ;;  %v2985_v11 = vld [vmem:[%s4106_s8 + $0x28] sm:$0xff]   ;;  %v2984_v21 = vld [vmem:[%s4106_s8 + $0x20] sm:$0xff]  }
 0x332   : > { %v2927_v38 = vunpack.c.l.bf16 %v2984_v21 }
 0x333   : > { %v2261_v27 = vmax.f32 %v2245_v43, 0.0 }
 0x335   : > { %v2269_v52 = vpack.c.bf16 %v2261_v27, %v2260_v18  ;;  %v2931_v18 = vunpack.c.l.bf16 %v2985_v11 }
 0x337   : > { %3423 = vmatmul.mubr.bf16.vlgmr.msra.gmra.mrb[96].mxu1 %v2269_v52 }
 0x3da   : > { %v3412_v24 = vpop.f32.mrb[92].mxu0 }
 0x3db   : > { %v2472_v8 = vmul.f32 %v3412_v24, %v4688_v0  ;;  %v2368_v25 = vpop.f32.mrb[93].mxu0 }
 0x3dc   : > { %v2470_v37 = vmul.f32 %v4688_v0, %v2368_v25  ;;  %v3413_v12 = vpop.f32.mrb[94].mxu0 }
 0x3dd   : > { %v2495_v41 = vadd.f32 %v4694_v47, %v2472_v8  ;;  %v2473_v63 = vmul.f32 %v3413_v12, %v4688_v0  ;;  %v2371_v61 = vpop.f32.mrb[95].mxu0  ;;  %v2932_v8 = vunpack.c.h.bf16 %v2985_v11  ;;  %v2928_v12 = vunpack.c.h.bf16 %v2984_v21 }
 0x3de   : > { %v2493_v7 = vadd.f32 %v4694_v47, %v2470_v37  ;;  %v2471_v60 = vmul.f32 %v4688_v0, %v2371_v61 }
 0x3df   : > { %v2511_v36 = vadd.f32 %v2915_v44, %v2495_v41  ;;  %v2496_v48 = vadd.f32 %v4694_v47, %v2473_v63 }
 0x3e0   : > { %v2509_v14 = vadd.f32 %v2911_v56, %v2493_v7  ;;  %v2494_v45 = vadd.f32 %v4694_v47, %v2471_v60 }
 0x3e1   : > { %v2512_v49 = vadd.f32 %v2916_v30, %v2496_v48  ;;  %v2527_v59 = vmax.f32 %v2511_v36, 0.0 }
 0x3e2   : > { %v2510_v51 = vadd.f32 %v2912_v19, %v2494_v45  ;;  %v2525_v29 = vmax.f32 %v2509_v14, 0.0 }
 0x3e3   : > { %v2528_v23 = vmax.f32 %v2512_v49, 0.0 }
 0x3e4   : > { %v2526_v5 = vmax.f32 %v2510_v51, 0.0 }
 0x3e5   : > { %v2949_v4 = vpack.c.bf16 %v2528_v23, %v2527_v59  ;;  %v2987_v59 = vld [vmem:[%s4106_s8 + $0x38] sm:$0xff]   ;;  %v2986_v23 = vld [vmem:[%s4106_s8 + $0x30] sm:$0xff]   ;;  %s2635_s8 = sshll.u32 %s4706_s16, 4  ;;  %s4751_s8 = int_to_ptr.vmem [resolvable:$true] %s2635_s8 }
 0x3e6   : > { %v2944_v55 = vpack.c.bf16 %v2526_v5, %v2525_v29  ;;  %v2939_v5 = vunpack.c.l.bf16 %v2987_v59  ;;  %v2935_v53 = vunpack.c.l.bf16 %v2986_v23  ;;  %s3742_s17 = scalar_lea.vmem %s4751_s8, 1024  ;;  %p3749_p1 = scmp.lt.s32.totalorder %s4751_s8, %s3747_s27 }
 0x3e7   : > { %2988 = vst [vmem:[%s4706_s16 + $0x8] sm:$0xff] %v2949_v4   ;;  %p3743_p3 = scmp.ne.s32.totalorder %s4751_s8, %s3742_s17  ;;  %p3750_p2 = scmp.lt.s32.totalorder %s3748_s29, %s3742_s17 }
 0x3e8   : > { %2945 = vst [vmem:[%s4706_s16] sm:$0xff] %v2944_v55  }
 0x3e9   : > { %p3744_p7 = pnand %p3743_p3, %p4049_p5  ;;  %p3751_p4 = por %p3750_p2, %p3749_p1 }
 0x3ea   : > { %v3416_v40 = vpop.f32.mrb[96].mxu0 }
 0x3eb   : > { %v2476_v35 = vmul.f32 %v3416_v40, %v4688_v0  ;;  %v2384_v26 = vpop.f32.mrb[97].mxu0  ;;  %p3745_p12 = pneg %p3744_p7 }
 0x3ec   : > { %v2474_v2 = vmul.f32 %v4688_v0, %v2384_v26  ;;  %v3417_v54 = vpop.f32.mrb[98].mxu0 }
 0x3ed   : > { %v2499_v16 = vadd.f32 %v4694_v47, %v2476_v35  ;;  %v2477_v20 = vmul.f32 %v3417_v54, %v4688_v0  ;;  %v2387_v33 = vpop.f32.mrb[99].mxu0  ;;  %v2940_v35 = vunpack.c.h.bf16 %v2987_v59  ;;  %v2936_v54 = vunpack.c.h.bf16 %v2986_v23  ;;  %p3752_p9 = pnand %p3751_p4, %p3745_p12 }
 0x3ee   : > { %v2497_v9 = vadd.f32 %v4694_v47, %v2474_v2  ;;  %v2475_v22 = vmul.f32 %v4688_v0, %v2387_v33 }
 0x3ef   : > { %v2515_v13 = vadd.f32 %v2923_v39, %v2499_v16  ;;  %v2500_v42 = vadd.f32 %v4694_v47, %v2477_v20 }
 0x3f0   : > { %v2513_v58 = vadd.f32 %v2919_v62, %v2497_v9  ;;  %v2498_v15 = vadd.f32 %v4694_v47, %v2475_v22 }
 0x3f1   : > { %v2516_v46 = vadd.f32 %v2924_v6, %v2500_v42  ;;  %v2531_v50 = vmax.f32 %v2515_v13, 0.0 }
 0x3f2   : > { %v2514_v1 = vadd.f32 %v2920_v3, %v2498_v15  ;;  %v2529_v10 = vmax.f32 %v2513_v58, 0.0 }
 0x3f3   : > { %v2532_v34 = vmax.f32 %v2516_v46, 0.0 }
 0x3f4   : > { %v2530_v32 = vmax.f32 %v2514_v1, 0.0 }
 0x3f5   : > { %v2959_v17 = vpack.c.bf16 %v2532_v34, %v2531_v50 }
 0x3f6   : > { %v2954_v31 = vpack.c.bf16 %v2530_v32, %v2529_v10 }
 0x3f7   : > { %2990 = vst [vmem:[%s4706_s16 + $0x18] sm:$0xff] %v2959_v17  }
 0x3f8   : > { %2989 = vst [vmem:[%s4706_s16 + $0x10] sm:$0xff] %v2954_v31  }
 0x3fa   : > { %v3420_v43 = vpop.f32.mrb[100].mxu0 }
 0x3fb   : > { %v2480_v27 = vmul.f32 %v3420_v43, %v4688_v0  ;;  %v2400_v52 = vpop.f32.mrb[101].mxu0 }
 0x3fc   : > { %v2478_v28 = vmul.f32 %v4688_v0, %v2400_v52  ;;  %v3421_v24 = vpop.f32.mrb[102].mxu0 }
 0x3fd   : > { %v2503_v44 = vadd.f32 %v4694_v47, %v2480_v27  ;;  %v2481_v25 = vmul.f32 %v3421_v24, %v4688_v0  ;;  %v2403_v56 = vpop.f32.mrb[103].mxu0 }
 0x3fe   : > { %v2501_v37 = vadd.f32 %v4694_v47, %v2478_v28  ;;  %v2479_v41 = vmul.f32 %v4688_v0, %v2403_v56 }
 0x3ff   : > { %v2519_v30 = vadd.f32 %v2931_v18, %v2503_v44  ;;  %v2504_v63 = vadd.f32 %v4694_v47, %v2481_v25 }
 0x400   : > { %v2517_v61 = vadd.f32 %v2927_v38, %v2501_v37  ;;  %v2502_v7 = vadd.f32 %v4694_v47, %v2479_v41 }
 0x401   : > { %v2520_v19 = vadd.f32 %v2932_v8, %v2504_v63  ;;  %v2535_v36 = vmax.f32 %v2519_v30, 0.0 }
 0x402   : > { %v2518_v60 = vadd.f32 %v2928_v12, %v2502_v7  ;;  %v2533_v14 = vmax.f32 %v2517_v61, 0.0 }
 0x403   : > { %v2536_v48 = vmax.f32 %v2520_v19, 0.0 }
 0x404   : > { %v2534_v45 = vmax.f32 %v2518_v60, 0.0 }
 0x405   : > { %v2969_v49 = vpack.c.bf16 %v2536_v48, %v2535_v36 }
 0x406   : > { %v2964_v51 = vpack.c.bf16 %v2534_v45, %v2533_v14 }
 0x407   : > { %2992 = vst [vmem:[%s4706_s16 + $0x28] sm:$0xff] %v2969_v49  }
 0x408   : > { %2991 = vst [vmem:[%s4706_s16 + $0x20] sm:$0xff] %v2964_v51  }
 0x40a   : > { %v3424_v29 = vpop.f32.mrb[96].mxu1 }
 0x40b   : > { %v2484_v4 = vmul.f32 %v3424_v29, %v4688_v0  ;;  %v2416_v55 = vpop.f32.mrb[97].mxu1 }
 0x40c   : > { %v2482_v57 = vmul.f32 %v4688_v0, %v2416_v55  ;;  %v3425_v40 = vpop.f32.mrb[98].mxu1 }
 0x40d   : > { %v2507_v39 = vadd.f32 %v4694_v47, %v2484_v4  ;;  %v2485_v26 = vmul.f32 %v3425_v40, %v4688_v0  ;;  %v2419_v62 = vpop.f32.mrb[99].mxu1 }
 0x40e   : > { %v2505_v2 = vadd.f32 %v4694_v47, %v2482_v57  ;;  %v2483_v16 = vmul.f32 %v4688_v0, %v2419_v62 }
 0x40f   : > { %v2523_v6 = vadd.f32 %v2939_v5, %v2507_v39  ;;  %v2508_v20 = vadd.f32 %v4694_v47, %v2485_v26 }
 0x410   : > { %v2521_v33 = vadd.f32 %v2935_v53, %v2505_v2  ;;  %v2506_v9 = vadd.f32 %v4694_v47, %v2483_v16 }
 0x411   : > { %v2524_v3 = vadd.f32 %v2940_v35, %v2508_v20  ;;  %v2539_v13 = vmax.f32 %v2523_v6, 0.0 }
 0x412   : > { %v2522_v22 = vadd.f32 %v2936_v54, %v2506_v9  ;;  %v2537_v58 = vmax.f32 %v2521_v33, 0.0 }
 0x413   : > { %v2540_v42 = vmax.f32 %v2524_v3, 0.0 }
 0x414   : > { %v2538_v15 = vmax.f32 %v2522_v22, 0.0 }
 0x415   : > { %v2979_v46 = vpack.c.bf16 %v2540_v42, %v2539_v13 }
 0x416   : > { %v2974_v0 = vpack.c.bf16 %v2538_v15, %v2537_v58 }
 0x417   : > { %2994 = vst [vmem:[%s4706_s16 + $0x38] sm:$0xff] %v2979_v46  }
 0x418   : > { %2993 = vst [vmem:[%s4706_s16 + $0x30] sm:$0xff] %v2974_v0  }
 0x419   : > { %3755 = shalt.err (!%p3752_p9)
}
 0x41a   : > { %s3756_s28 = scalar_lea.hbm %s4749_s18, 1024  ;;  %s3760_s16 = scalar_lea.hbm %s4839_s30, 2048 }
 0x41b   : > { %p3757_p0 = scmp.ne.s32.totalorder %s4749_s18, %s3756_s28  ;;  %p3761_p13 = scmp.lt.u32.totalorder %s4749_s18, %s4839_s30 }
 0x41c   : > { %p3762_p6 = scmp.lt.u32.totalorder %s3760_s16, %s3756_s28  ;;  %p3764_p3 = scmp.lt.u32.totalorder %s3756_s28, %s4749_s18 }
 0x41d   : > { %p3758_p11 = pnand %p3757_p0, %p4049_p5 }
 0x41e   : > { %p3763_p10 = por %p3762_p6, %p3761_p13 }
 0x41f   : > { %p3759_p8 = pneg %p3758_p11 }
 0x420   : > { %p3765_p7 = por %p3764_p3, %p3763_p10 }
 0x422   : > { %p3766_p12 = pnand %p3765_p7, %p3759_p8 }
 0x424   : > { %3769 = shalt.err (!%p3766_p12)
}
 0x425   : > { %s3828_s26 = smov 64   ;;  %s3829_s17 = smov 4  }
 0x426   : > { %3457 = dma.vmem_to_hbm [thread:$0]  (%p4049_p5), %s4751_s8, 1024, %s4749_s18, %s2622_s25, %s3828_s26, %s3828_s26, %s3829_s17  }
 0x427 PF: > { %s4840_s13 = sld [smem:[#allocation15_spill]]  ;;  %s4841_s27 = sld [smem:[#allocation16_spill]] }
 0x428   : > { %p4843_p2 = scmp.ge.s32.totalorder %s3816_s24, 2 }
 0x42d   : > { %s2650_s29 = sand.u32 1, %s4840_s13   ;;  %p4842_p1 = scmp.ne.s32.totalorder %s4841_s27, 0 }
 0x42e   : > { %s2651_s28 = scalar_lea.sflag [#allocation4], %s2650_s29 }
 0x42f   : > { %p3474_p4 = pnand %p4843_p2, %p4842_p1 }
 0x431   : > { %3799 = dma.done.wait (!%p3474_p4), %s2651_s28, 1024  }
 0x432   : > { %3801 = vsyncadd (!%p3474_p4), %s2651_s28, 4294966272  ;;  %s4844_s19 = smov %s4035_s21  ;;  %p27_p9 = scmp.ge.s32.totalorder %s4035_s21, 4  }
 0x433   : > { %s4845_s21 = smov %s3808_s22  ;;  %s4846_s22 = smov %s3812_s23 }
 0x434   : > { %s4847_s23 = smov %s4045_s11  ;;  %s4848_s24 = smov %s4844_s19 }
 0x435   :  { %29 = sbr.rel (!%p27_p9) target bundleno = 12 (0xc), region = 128 }
 0x43c   :  { %2656 = vsyncpa [#allocation3], 1 }
 0x43d   :  { %2658 = vsyncpa [#allocation3 + $0x1], 1 }
 0x43e   :  { %2659 = vsyncpa [#allocation6], 1 }
 0x43f   :  { %2660 = vsyncpa [#allocation9], 1 }
 0x440   :  { %2661 = vsyncpa [#allocation4], 1 }
 0x441   :  { %2663 = vsyncpa [#allocation4 + $0x1], 1 }

</bundles_post_ra>
